<compile_context>
chip_gen: v6e
topology: v6e:2x2x1
jax: 0.10.0
libtpu: 0.0.40
codegen_flags: <defaults>
</compile_context>

<pallas_src>
import math

import jax
import jax.numpy as jnp
from jax import lax
from jax.experimental import pallas as pl
from jax.experimental.pallas import tpu as pltpu


def _round_up(x, m):
    return (x + m - 1) // m * m


def make_sanet_kernel(n_head, d_head, mid, Lq, Lk_pad, Bt, mid_chunk):
    inv_heads = 1.0 / n_head
    dn = (((1,), (1,)), ((), ()))        # contract last dims: A @ B^T
    n_rows = mid + 1                     # mid rows of w1 + one "ones" row (-> attn)

    def kernel(qp_ref, kp_ref, w1e_ref, b1e_ref, w2de_ref, thr_ref,
               bin_out_ref, attn_out_ref):
        # Loop invariants, hoisted (JAX does not CSE broadcast_in_dim).
        w1e = w1e_ref[...]               # (mid+1, d)          matmul dtype
        b1e = b1e_ref[...]               # (1, mid*Lk_pad)     f32
        w2de = w2de_ref[...]             # (1, mid*Lk_pad)     f32
        thr = thr_ref[0]                 # scalar b2[0] - b2[1]

        def one_batch(b):
            qp = qp_ref[b]               # (Lq, H)
            kp = kp_ref[b]               # (Lk_pad, H)
            bin_acc = jnp.zeros((Lq, Lk_pad), jnp.float32)
            attn_acc = jnp.zeros((Lq, Lk_pad), jnp.float32)

            for h in range(n_head):      # unrolled; per-head temps die each iter
                qh = qp[:, h * d_head:(h + 1) * d_head]      # (Lq, d)
                kh = kp[:, h * d_head:(h + 1) * d_head]      # (Lk_pad, d)

                attn = None
                diff = jnp.zeros((Lq, Lk_pad), jnp.float32)

                # K-side expansion: RHS row (m, j) = w1[m] * k[j]; Lk_pad is a
                # multiple of 8 so the reshape below is a free (view-like)
                # sublane merge.  The trailing ones-row of w1e makes the last
                # Lk_pad output columns the raw q.k attention logits.
                for r0 in range(0, n_rows, mid_chunk):
                    r1 = min(r0 + mid_chunk, n_rows)
                    nh = min(r1, mid) - r0           # hidden-unit rows this chunk
                    has_attn = (r1 == n_rows)

                    rhs = (w1e[r0:r1, None, :] * kh[None, :, :]).reshape(
                        (r1 - r0) * Lk_pad, d_head)
                    out = lax.dot_general(qh, rhs, dn,
                                          preferred_element_type=jnp.float32)
                    if nh > 0:
                        c0, c1 = r0 * Lk_pad, (r0 + nh) * Lk_pad
                        hid = out[:, :nh * Lk_pad] + b1e[:, c0:c1]
                        w = jnp.maximum(hid, 0.0) * w2de[:, c0:c1]
                        for m in range(nh):          # reduce over hidden units
                            diff = diff + w[:, m * Lk_pad:(m + 1) * Lk_pad]
                    if has_attn:
                        # 1/sqrt(d_head) scale intentionally dropped: binary
                        # doesn't use attn and normalize(.)**2 is scale-invariant.
                        attn = out[:, nh * Lk_pad:]

                binary = (diff > thr).astype(jnp.float32)

                # masked attention, then F.normalize(p=2, dim=-1)**2
                #   == attn^2 / sum(attn^2); reciprocal on the EUP slot.
                masked = attn * binary
                msq = masked * masked
                sumsq = jnp.sum(msq, axis=-1, keepdims=True)
                attn_acc = attn_acc + msq * pl.reciprocal(
                    jnp.maximum(sumsq, 1e-24), approx=True)
                bin_acc = bin_acc + binary

            bin_out_ref[b] = bin_acc * inv_heads
            attn_out_ref[b] = attn_acc * inv_heads

        if Bt == 1:
            one_batch(0)
        else:
            def body(b, carry):          # fori_loop bounds live ranges across b
                one_batch(b)
                return carry
            lax.fori_loop(0, Bt, body, 0, unroll=False)

    return kernel


def _pick_block_batch(B, per_b_bytes, *, max_bt=8, min_steps=4, budget=16 << 20):
    """Largest divisor of B (<= max_bt) whose double-buffered activation/output
    blocks fit `budget` and which leaves >= min_steps grid steps (so v7x's two
    TensorCores each get several balanced steps)."""
    best = 1
    for bt in range(1, min(B, max_bt) + 1):
        if B % bt != 0:
            continue
        if B // bt < min(min_steps, B):
            continue
        if 2 * bt * per_b_bytes > budget:
            continue
        best = bt
    return best


def sanet_pallas(q, k, params, n_head=8, *, use_bf16=False,
                 block_batch=None, mid_chunk=None):
    B, Lq, H = q.shape
    _, Lk, _ = k.shape
    assert H % n_head == 0
    d_head = H // n_head
    mid = d_head // 2
    assert mid >= 1
    # Pad Lk to a sublane multiple so the K-side expansion reshape is free.
    Lk_pad = _round_up(Lk, 8)

    act_dtype = jnp.bfloat16 if use_bf16 else jnp.float32
    act_bytes = 2 if use_bf16 else 4

    # Q/K projections as one big, well-shaped XLA matmul each (M = B*L).  With
    # use_bf16 the activations stay bf16 in HBM (halves DMA/VMEM block bytes).
    qp = (q @ params["wq"].T + params["bq"]).astype(act_dtype)
    kp = (k @ params["wk"].T + params["bk"]).astype(act_dtype)
    if Lk_pad != Lk:
        # Zero k rows give zero attention logits, so padded columns never
        # contribute to the row normalization; they are sliced off at the end.
        kp = jnp.pad(kp, ((0, 0), (0, Lk_pad - Lk), (0, 0)))

    # Parameter preprocessing (once, outside the kernel).
    w1 = params["w1"].astype(jnp.float32)                             # (mid, d)
    w1_ext = jnp.concatenate([w1, jnp.ones((1, d_head), jnp.float32)], axis=0)
    w1_ext = w1_ext.astype(act_dtype)                                 # (mid+1, d)
    b1_exp = jnp.repeat(params["b1"].astype(jnp.float32),
                        Lk_pad).reshape(1, mid * Lk_pad)
    w2d = (params["w2"][1] - params["w2"][0]).astype(jnp.float32)     # (mid,)
    w2d_exp = jnp.repeat(w2d, Lk_pad).reshape(1, mid * Lk_pad)
    thr = (params["b2"][0] - params["b2"][1]).reshape(1).astype(jnp.float32)

    # Chunk the fused matmul over hidden units only if its per-head f32
    # intermediate (Lq, chunk*Lk_pad) would get large (it is tiny at typical
    # SANet shapes, so the default is one fused matmul per head incl. attn).
    if mid_chunk is None:
        budget = 8 << 20
        per_row = (Lq * Lk_pad + Lk_pad * d_head) * 4
        mid_chunk = max(1, min(mid + 1, budget // max(per_row, 1)))

    # Batch tile + VMEM limit (chip-aware but conservative for v7x's 64 MiB).
    per_b_bytes = (Lq * H + Lk_pad * H) * act_bytes + 2 * Lq * Lk_pad * 4
    if block_batch is None:
        block_batch = _pick_block_batch(B, per_b_bytes)
    Bt = block_batch
    assert B % Bt == 0, "block_batch must divide the batch size"

    param_bytes = (mid + 1) * d_head * act_bytes + 2 * mid * Lk_pad * 4 + 4
    inter_bytes = (3 * Lq * (mid_chunk + 1) * Lk_pad
                   + (mid_chunk + 1) * Lk_pad * d_head) * 4
    est = 2 * 2 * Bt * per_b_bytes + 2 * param_bytes + inter_bytes
    try:
        cap = int(getattr(pltpu.get_tpu_info(), "vmem_capacity_bytes", 64 << 20))
    except Exception:
        cap = 64 << 20              # conservative fallback: v7x per-core VMEM
    vmem_limit = int(min(max(32 << 20, 3 * est), int(0.85 * cap)))
    vmem_limit = max(vmem_limit, 16 << 20)

    kernel = make_sanet_kernel(n_head, d_head, mid, Lq, Lk_pad, Bt, mid_chunk)

    in_specs = [
        pl.BlockSpec((Bt, Lq, H), lambda i: (i, 0, 0)),        # qp
        pl.BlockSpec((Bt, Lk_pad, H), lambda i: (i, 0, 0)),    # kp (padded)
        pl.BlockSpec((mid + 1, d_head), lambda i: (0, 0)),     # w1_ext
        pl.BlockSpec((1, mid * Lk_pad), lambda i: (0, 0)),     # b1 expanded
        pl.BlockSpec((1, mid * Lk_pad), lambda i: (0, 0)),     # w2diff expanded
        pl.BlockSpec(memory_space=pltpu.MemorySpace.SMEM),     # thr scalar
    ]
    out_specs = (
        pl.BlockSpec((Bt, Lq, Lk_pad), lambda i: (i, 0, 0)),
        pl.BlockSpec((Bt, Lq, Lk_pad), lambda i: (i, 0, 0)),
    )
    out_shape = (
        jax.ShapeDtypeStruct((B, Lq, Lk_pad), jnp.float32),
        jax.ShapeDtypeStruct((B, Lq, Lk_pad), jnp.float32),
    )

    bin_pad, attn_pad = pl.pallas_call(
        kernel,
        out_shape=out_shape,
        grid=(B // Bt,),
        in_specs=in_specs,
        out_specs=out_specs,
        compiler_params=pltpu.CompilerParams(
            dimension_semantics=("parallel",),
            vmem_limit_bytes=vmem_limit),
    )(qp, kp, w1_ext, b1_exp, w2d_exp, thr)

    # Output last dim stays Lk_pad (multiple of 8): padding it to 128 would make
    # stores unmasked but ~3x the HBM write bytes at typical Lk; the unpadded
    # columns are sliced off here.
    return bin_pad[:, :, :Lk], attn_pad[:, :, :Lk]


def sanet_reference(q, k, params, n_head=8):
    """Pure-JAX reference mirroring the PyTorch forward (eval mode)."""
    B, Lq, H = q.shape
    d = H // n_head
    qp = q @ params["wq"].T + params["bq"]
    kp = k @ params["wk"].T + params["bk"]
    qh = qp.reshape(B, Lq, n_head, d).transpose(0, 2, 1, 3)       # (B,h,Lq,d)
    kh = kp.reshape(B, -1, n_head, d).transpose(0, 2, 1, 3)       # (B,h,Lk,d)
    logit = qh[:, :, :, None, :] * kh[:, :, None, :, :]           # (B,h,Lq,Lk,d)
    attn = logit.sum(-1) / math.sqrt(d)
    hid = jax.nn.relu(jnp.einsum("bhijd,md->bhijm", logit, params["w1"]) + params["b1"])
    cls = jnp.einsum("bhijm,cm->bhijc", hid, params["w2"]) + params["b2"]
    binary = (cls[..., 1] > cls[..., 0]).astype(jnp.float32)
    attn = attn * binary
    nrm = jnp.sqrt(jnp.sum(attn * attn, axis=-1, keepdims=True))
    attn = (attn / jnp.maximum(nrm, 1e-12)) ** 2
    return binary.mean(axis=1), attn.mean(axis=1)


def _make_case(key, B, Lq, Lk, H, n_head):
    d = H // n_head
    mid = d // 2
    keys = jax.random.split(key, 10)

    def linear_init(kw, kb, out_f, in_f):
        bound = 1.0 / math.sqrt(in_f)
        w = jax.random.uniform(kw, (out_f, in_f), jnp.float32, -bound, bound)
        b = jax.random.uniform(kb, (out_f,), jnp.float32, -bound, bound)
        return w, b

    wq, bq = linear_init(keys[0], keys[1], H, H)
    wk, bk = linear_init(keys[2], keys[3], H, H)
    w1, b1 = linear_init(keys[4], keys[5], mid, d)   # MLP first linear (d -> d//2)
    w2, b2 = linear_init(keys[6], keys[7], 2, mid)   # MLP second linear (d//2 -> 2)
    params = dict(wq=wq, bq=bq, wk=wk, bk=bk, w1=w1, b1=b1, w2=w2, b2=b2)
    q = jax.random.normal(keys[8], (B, Lq, H), jnp.float32)
    k = jax.random.normal(keys[9], (B, Lk, H), jnp.float32)
    return q, k, params


if __name__ == "__main__":
    key = jax.random.PRNGKey(0)
    key0, key1 = jax.random.split(key)
    n_head = 8

    # Case 1: small canonical shape (Lq == Lk, already sublane aligned).
    q, k, params = _make_case(key0, B=2, Lq=8, Lk=8, H=32, n_head=n_head)
    binary, attn = sanet_pallas(q, k, params, n_head=n_head)
    jax.block_until_ready((binary, attn))
    b_ref, a_ref = sanet_reference(q, k, params, n_head=n_head)
    assert jnp.allclose(binary, b_ref, rtol=1e-4, atol=1e-4), "binary mismatch"
    # attn uses the approximate EUP reciprocal for the normalize denominator.
    assert jnp.allclose(attn, a_ref, rtol=1e-2, atol=2e-4), "attn mismatch"

    # Chunked fused-MLP path (mid_chunk=1 exercises multi-chunk + attn-only chunk).
    b_c, a_c = sanet_pallas(q, k, params, n_head=n_head, mid_chunk=1)
    jax.block_until_ready((b_c, a_c))
    assert jnp.allclose(b_c, b_ref, rtol=1e-4, atol=1e-4), "chunked binary mismatch"
    assert jnp.allclose(a_c, a_ref, rtol=1e-2, atol=2e-4), "chunked attn mismatch"

    # Case 2: Lq != Lk and Lk not a multiple of 8 (exercises k padding + slicing).
    q2, k2, params2 = _make_case(key1, B=4, Lq=8, Lk=5, H=32, n_head=n_head)
    b2o, a2o = sanet_pallas(q2, k2, params2, n_head=n_head)
    jax.block_until_ready((b2o, a2o))
    b2r, a2r = sanet_reference(q2, k2, params2, n_head=n_head)
    assert jnp.allclose(b2o, b2r, rtol=1e-4, atol=1e-4), "padded binary mismatch"
    assert jnp.allclose(a2o, a2r, rtol=1e-2, atol=2e-4), "padded attn mismatch"

    # bf16 MXU fast path (v6e/v7x): f32 accumulation, but the hard binary
    # threshold can flip near the decision boundary, so check a bounded
    # head-vote mismatch rate rather than exact agreement.
    b16, a16 = sanet_pallas(q, k, params, n_head=n_head, use_bf16=True)
    jax.block_until_ready((b16, a16))
    assert bool(jnp.all(jnp.isfinite(b16))) and bool(jnp.all(jnp.isfinite(a16)))
    mismatch = float(jnp.mean((jnp.abs(b16 - b_ref) > 1e-3).astype(jnp.float32)))
    assert mismatch < 0.25, f"bf16 binary mismatch rate too high: {mismatch}"

    print("KERNEL_OK")
</pallas_src>

<mosaic_0001>
module attributes {stable_mosaic.version = 11 : i64} {
  func.func @kernel(%arg0: i32, %arg1: memref<1x8x32xf32, #tpu.memory_space<vmem>>, %arg2: memref<1x8x32xf32, #tpu.memory_space<vmem>>, %arg3: memref<3x4xf32, #tpu.memory_space<vmem>>, %arg4: memref<1x16xf32, #tpu.memory_space<vmem>>, %arg5: memref<1x16xf32, #tpu.memory_space<vmem>>, %arg6: memref<1xf32, #tpu.memory_space<smem>>, %arg7: memref<1x8x8xf32, #tpu.memory_space<vmem>>, %arg8: memref<1x8x8xf32, #tpu.memory_space<vmem>>) attributes {dimension_semantics = [#tpu.dimension_semantics<parallel>], iteration_bounds = array<i64: 2>, scalar_prefetch = 0 : i64, scratch_operands = 0 : i64, tpu.core_type = #tpu.core_type<tc>, window_params = [{transform_indices = @transform_0, window_bounds = array<i64: 1, 8, 32>}, {transform_indices = @transform_1, window_bounds = array<i64: 1, 8, 32>}, {pipeline_mode = #tpu.pipeline_mode<synchronous>, transform_indices = @transform_2, window_bounds = array<i64: 3, 4>}, {pipeline_mode = #tpu.pipeline_mode<synchronous>, transform_indices = @transform_3, window_bounds = array<i64: 1, 16>}, {pipeline_mode = #tpu.pipeline_mode<synchronous>, transform_indices = @transform_4, window_bounds = array<i64: 1, 16>}, {transform_indices = @transform_5, window_bounds = array<i64: 1>}, {transform_indices = @transform_6, window_bounds = array<i64: 1, 8, 8>}, {transform_indices = @transform_7, window_bounds = array<i64: 1, 8, 8>}]} {
    %c0 = arith.constant 0 : index
    %c0_0 = arith.constant 0 : index
    %0 = vector.load %arg3[%c0, %c0_0] : memref<3x4xf32, #tpu.memory_space<vmem>>, vector<3x4xf32>
    %c0_1 = arith.constant 0 : index
    %c0_2 = arith.constant 0 : index
    %1 = vector.load %arg4[%c0_1, %c0_2] : memref<1x16xf32, #tpu.memory_space<vmem>>, vector<1x16xf32>
    %c0_3 = arith.constant 0 : index
    %c0_4 = arith.constant 0 : index
    %2 = vector.load %arg5[%c0_3, %c0_4] : memref<1x16xf32, #tpu.memory_space<vmem>>, vector<1x16xf32>
    %c0_5 = arith.constant 0 : index
    %3 = memref.load %arg6[%c0_5] : memref<1xf32, #tpu.memory_space<smem>>
    %c0_6 = arith.constant 0 : index
    %c0_7 = arith.constant 0 : index
    %c0_8 = arith.constant 0 : index
    %4 = vector.load %arg1[%c0_6, %c0_7, %c0_8] : memref<1x8x32xf32, #tpu.memory_space<vmem>>, vector<1x8x32xf32>
    %5 = vector.shape_cast %4 : vector<1x8x32xf32> to vector<8x32xf32>
    %c0_9 = arith.constant 0 : index
    %c0_10 = arith.constant 0 : index
    %c0_11 = arith.constant 0 : index
    %6 = vector.load %arg2[%c0_9, %c0_10, %c0_11] : memref<1x8x32xf32, #tpu.memory_space<vmem>>, vector<1x8x32xf32>
    %7 = vector.shape_cast %6 : vector<1x8x32xf32> to vector<8x32xf32>
    %cst = arith.constant 0.000000e+00 : f32
    %8 = vector.broadcast %cst : f32 to vector<8x8xf32>
    %cst_12 = arith.constant 0.000000e+00 : f32
    %9 = vector.broadcast %cst_12 : f32 to vector<8x8xf32>
    %10 = vector.extract_strided_slice %5 {offsets = [0, 0], sizes = [8, 4], strides = [1, 1]} : vector<8x32xf32> to vector<8x4xf32>
    %11 = vector.extract_strided_slice %7 {offsets = [0, 0], sizes = [8, 4], strides = [1, 1]} : vector<8x32xf32> to vector<8x4xf32>
    %cst_13 = arith.constant 0.000000e+00 : f32
    %12 = vector.broadcast %cst_13 : f32 to vector<8x8xf32>
    %13 = vector.shape_cast %0 : vector<3x4xf32> to vector<3x1x4xf32>
    %14 = vector.shape_cast %11 : vector<8x4xf32> to vector<1x8x4xf32>
    %15 = vector.broadcast %13 : vector<3x1x4xf32> to vector<3x8x4xf32>
    %16 = vector.broadcast %14 : vector<1x8x4xf32> to vector<3x8x4xf32>
    %17 = arith.mulf %15, %16 : vector<3x8x4xf32>
    %18 = vector.shape_cast %17 : vector<3x8x4xf32> to vector<24x4xf32>
    %cst_14 = arith.constant dense<0.000000e+00> : vector<8x24xf32>
    %19 = tpu.matmul %10, %18, %cst_14 {dimension_numbers = #tpu.dot_dimension_numbers<[1], [1], [0], [0], [0, 0, 1, 0], [], []>} : vector<8x4xf32>, vector<24x4xf32>, vector<8x24xf32> -> vector<8x24xf32>
    %20 = vector.extract_strided_slice %19 {offsets = [0, 0], sizes = [8, 16], strides = [1, 1]} : vector<8x24xf32> to vector<8x16xf32>
    %21 = vector.broadcast %1 : vector<1x16xf32> to vector<8x16xf32>
    %22 = arith.addf %20, %21 : vector<8x16xf32>
    %cst_15 = arith.constant 0.000000e+00 : f32
    %23 = vector.broadcast %cst_15 : f32 to vector<8x16xf32>
    %24 = arith.maximumf %22, %23 : vector<8x16xf32>
    %25 = vector.broadcast %2 : vector<1x16xf32> to vector<8x16xf32>
    %26 = arith.mulf %24, %25 : vector<8x16xf32>
    %27 = vector.extract_strided_slice %26 {offsets = [0, 0], sizes = [8, 8], strides = [1, 1]} : vector<8x16xf32> to vector<8x8xf32>
    %28 = arith.addf %12, %27 : vector<8x8xf32>
    %29 = vector.extract_strided_slice %26 {offsets = [0, 8], sizes = [8, 8], strides = [1, 1]} : vector<8x16xf32> to vector<8x8xf32>
    %30 = arith.addf %28, %29 : vector<8x8xf32>
    %31 = vector.extract_strided_slice %19 {offsets = [0, 16], sizes = [8, 8], strides = [1, 1]} : vector<8x24xf32> to vector<8x8xf32>
    %32 = vector.broadcast %3 : f32 to vector<8x8xf32>
    %33 = arith.cmpf ogt, %30, %32 : vector<8x8xf32>
    %34 = arith.extui %33 : vector<8x8xi1> to vector<8x8xi32>
    %35 = arith.sitofp %34 : vector<8x8xi32> to vector<8x8xf32>
    %36 = arith.mulf %31, %35 : vector<8x8xf32>
    %37 = arith.mulf %36, %36 : vector<8x8xf32>
    %cst_16 = arith.constant dense<0.000000e+00> : vector<8xf32>
    %38 = vector.multi_reduction <add>, %37, %cst_16 [1] : vector<8x8xf32> to vector<8xf32>
    %39 = vector.shape_cast %38 : vector<8xf32> to vector<8x1xf32>
    %cst_17 = arith.constant 1.000000e-24 : f32
    %40 = vector.broadcast %cst_17 : f32 to vector<8x1xf32>
    %41 = arith.maximumf %39, %40 : vector<8x1xf32>
    %42 = tpu.reciprocal %41 {approx = true} : vector<8x1xf32> -> vector<8x1xf32>
    %43 = vector.broadcast %42 : vector<8x1xf32> to vector<8x8xf32>
    %44 = arith.mulf %37, %43 : vector<8x8xf32>
    %45 = arith.addf %9, %44 : vector<8x8xf32>
    %46 = arith.addf %8, %35 : vector<8x8xf32>
    %47 = vector.extract_strided_slice %5 {offsets = [0, 4], sizes = [8, 4], strides = [1, 1]} : vector<8x32xf32> to vector<8x4xf32>
    %48 = vector.extract_strided_slice %7 {offsets = [0, 4], sizes = [8, 4], strides = [1, 1]} : vector<8x32xf32> to vector<8x4xf32>
    %cst_18 = arith.constant 0.000000e+00 : f32
    %49 = vector.broadcast %cst_18 : f32 to vector<8x8xf32>
    %50 = vector.shape_cast %0 : vector<3x4xf32> to vector<3x1x4xf32>
    %51 = vector.shape_cast %48 : vector<8x4xf32> to vector<1x8x4xf32>
    %52 = vector.broadcast %50 : vector<3x1x4xf32> to vector<3x8x4xf32>
    %53 = vector.broadcast %51 : vector<1x8x4xf32> to vector<3x8x4xf32>
    %54 = arith.mulf %52, %53 : vector<3x8x4xf32>
    %55 = vector.shape_cast %54 : vector<3x8x4xf32> to vector<24x4xf32>
    %cst_19 = arith.constant dense<0.000000e+00> : vector<8x24xf32>
    %56 = tpu.matmul %47, %55, %cst_19 {dimension_numbers = #tpu.dot_dimension_numbers<[1], [1], [0], [0], [0, 0, 1, 0], [], []>} : vector<8x4xf32>, vector<24x4xf32>, vector<8x24xf32> -> vector<8x24xf32>
    %57 = vector.extract_strided_slice %56 {offsets = [0, 0], sizes = [8, 16], strides = [1, 1]} : vector<8x24xf32> to vector<8x16xf32>
    %58 = vector.broadcast %1 : vector<1x16xf32> to vector<8x16xf32>
    %59 = arith.addf %57, %58 : vector<8x16xf32>
    %cst_20 = arith.constant 0.000000e+00 : f32
    %60 = vector.broadcast %cst_20 : f32 to vector<8x16xf32>
    %61 = arith.maximumf %59, %60 : vector<8x16xf32>
    %62 = vector.broadcast %2 : vector<1x16xf32> to vector<8x16xf32>
    %63 = arith.mulf %61, %62 : vector<8x16xf32>
    %64 = vector.extract_strided_slice %63 {offsets = [0, 0], sizes = [8, 8], strides = [1, 1]} : vector<8x16xf32> to vector<8x8xf32>
    %65 = arith.addf %49, %64 : vector<8x8xf32>
    %66 = vector.extract_strided_slice %63 {offsets = [0, 8], sizes = [8, 8], strides = [1, 1]} : vector<8x16xf32> to vector<8x8xf32>
    %67 = arith.addf %65, %66 : vector<8x8xf32>
    %68 = vector.extract_strided_slice %56 {offsets = [0, 16], sizes = [8, 8], strides = [1, 1]} : vector<8x24xf32> to vector<8x8xf32>
    %69 = vector.broadcast %3 : f32 to vector<8x8xf32>
    %70 = arith.cmpf ogt, %67, %69 : vector<8x8xf32>
    %71 = arith.extui %70 : vector<8x8xi1> to vector<8x8xi32>
    %72 = arith.sitofp %71 : vector<8x8xi32> to vector<8x8xf32>
    %73 = arith.mulf %68, %72 : vector<8x8xf32>
    %74 = arith.mulf %73, %73 : vector<8x8xf32>
    %cst_21 = arith.constant dense<0.000000e+00> : vector<8xf32>
    %75 = vector.multi_reduction <add>, %74, %cst_21 [1] : vector<8x8xf32> to vector<8xf32>
    %76 = vector.shape_cast %75 : vector<8xf32> to vector<8x1xf32>
    %cst_22 = arith.constant 1.000000e-24 : f32
    %77 = vector.broadcast %cst_22 : f32 to vector<8x1xf32>
    %78 = arith.maximumf %76, %77 : vector<8x1xf32>
    %79 = tpu.reciprocal %78 {approx = true} : vector<8x1xf32> -> vector<8x1xf32>
    %80 = vector.broadcast %79 : vector<8x1xf32> to vector<8x8xf32>
    %81 = arith.mulf %74, %80 : vector<8x8xf32>
    %82 = arith.addf %45, %81 : vector<8x8xf32>
    %83 = arith.addf %46, %72 : vector<8x8xf32>
    %84 = vector.extract_strided_slice %5 {offsets = [0, 8], sizes = [8, 4], strides = [1, 1]} : vector<8x32xf32> to vector<8x4xf32>
    %85 = vector.extract_strided_slice %7 {offsets = [0, 8], sizes = [8, 4], strides = [1, 1]} : vector<8x32xf32> to vector<8x4xf32>
    %cst_23 = arith.constant 0.000000e+00 : f32
    %86 = vector.broadcast %cst_23 : f32 to vector<8x8xf32>
    %87 = vector.shape_cast %0 : vector<3x4xf32> to vector<3x1x4xf32>
    %88 = vector.shape_cast %85 : vector<8x4xf32> to vector<1x8x4xf32>
    %89 = vector.broadcast %87 : vector<3x1x4xf32> to vector<3x8x4xf32>
    %90 = vector.broadcast %88 : vector<1x8x4xf32> to vector<3x8x4xf32>
    %91 = arith.mulf %89, %90 : vector<3x8x4xf32>
    %92 = vector.shape_cast %91 : vector<3x8x4xf32> to vector<24x4xf32>
    %cst_24 = arith.constant dense<0.000000e+00> : vector<8x24xf32>
    %93 = tpu.matmul %84, %92, %cst_24 {dimension_numbers = #tpu.dot_dimension_numbers<[1], [1], [0], [0], [0, 0, 1, 0], [], []>} : vector<8x4xf32>, vector<24x4xf32>, vector<8x24xf32> -> vector<8x24xf32>
    %94 = vector.extract_strided_slice %93 {offsets = [0, 0], sizes = [8, 16], strides = [1, 1]} : vector<8x24xf32> to vector<8x16xf32>
    %95 = vector.broadcast %1 : vector<1x16xf32> to vector<8x16xf32>
    %96 = arith.addf %94, %95 : vector<8x16xf32>
    %cst_25 = arith.constant 0.000000e+00 : f32
    %97 = vector.broadcast %cst_25 : f32 to vector<8x16xf32>
    %98 = arith.maximumf %96, %97 : vector<8x16xf32>
    %99 = vector.broadcast %2 : vector<1x16xf32> to vector<8x16xf32>
    %100 = arith.mulf %98, %99 : vector<8x16xf32>
    %101 = vector.extract_strided_slice %100 {offsets = [0, 0], sizes = [8, 8], strides = [1, 1]} : vector<8x16xf32> to vector<8x8xf32>
    %102 = arith.addf %86, %101 : vector<8x8xf32>
    %103 = vector.extract_strided_slice %100 {offsets = [0, 8], sizes = [8, 8], strides = [1, 1]} : vector<8x16xf32> to vector<8x8xf32>
    %104 = arith.addf %102, %103 : vector<8x8xf32>
    %105 = vector.extract_strided_slice %93 {offsets = [0, 16], sizes = [8, 8], strides = [1, 1]} : vector<8x24xf32> to vector<8x8xf32>
    %106 = vector.broadcast %3 : f32 to vector<8x8xf32>
    %107 = arith.cmpf ogt, %104, %106 : vector<8x8xf32>
    %108 = arith.extui %107 : vector<8x8xi1> to vector<8x8xi32>
    %109 = arith.sitofp %108 : vector<8x8xi32> to vector<8x8xf32>
    %110 = arith.mulf %105, %109 : vector<8x8xf32>
    %111 = arith.mulf %110, %110 : vector<8x8xf32>
    %cst_26 = arith.constant dense<0.000000e+00> : vector<8xf32>
    %112 = vector.multi_reduction <add>, %111, %cst_26 [1] : vector<8x8xf32> to vector<8xf32>
    %113 = vector.shape_cast %112 : vector<8xf32> to vector<8x1xf32>
    %cst_27 = arith.constant 1.000000e-24 : f32
    %114 = vector.broadcast %cst_27 : f32 to vector<8x1xf32>
    %115 = arith.maximumf %113, %114 : vector<8x1xf32>
    %116 = tpu.reciprocal %115 {approx = true} : vector<8x1xf32> -> vector<8x1xf32>
    %117 = vector.broadcast %116 : vector<8x1xf32> to vector<8x8xf32>
    %118 = arith.mulf %111, %117 : vector<8x8xf32>
    %119 = arith.addf %82, %118 : vector<8x8xf32>
    %120 = arith.addf %83, %109 : vector<8x8xf32>
    %121 = vector.extract_strided_slice %5 {offsets = [0, 12], sizes = [8, 4], strides = [1, 1]} : vector<8x32xf32> to vector<8x4xf32>
    %122 = vector.extract_strided_slice %7 {offsets = [0, 12], sizes = [8, 4], strides = [1, 1]} : vector<8x32xf32> to vector<8x4xf32>
    %cst_28 = arith.constant 0.000000e+00 : f32
    %123 = vector.broadcast %cst_28 : f32 to vector<8x8xf32>
    %124 = vector.shape_cast %0 : vector<3x4xf32> to vector<3x1x4xf32>
    %125 = vector.shape_cast %122 : vector<8x4xf32> to vector<1x8x4xf32>
    %126 = vector.broadcast %124 : vector<3x1x4xf32> to vector<3x8x4xf32>
    %127 = vector.broadcast %125 : vector<1x8x4xf32> to vector<3x8x4xf32>
    %128 = arith.mulf %126, %127 : vector<3x8x4xf32>
    %129 = vector.shape_cast %128 : vector<3x8x4xf32> to vector<24x4xf32>
    %cst_29 = arith.constant dense<0.000000e+00> : vector<8x24xf32>
    %130 = tpu.matmul %121, %129, %cst_29 {dimension_numbers = #tpu.dot_dimension_numbers<[1], [1], [0], [0], [0, 0, 1, 0], [], []>} : vector<8x4xf32>, vector<24x4xf32>, vector<8x24xf32> -> vector<8x24xf32>
    %131 = vector.extract_strided_slice %130 {offsets = [0, 0], sizes = [8, 16], strides = [1, 1]} : vector<8x24xf32> to vector<8x16xf32>
    %132 = vector.broadcast %1 : vector<1x16xf32> to vector<8x16xf32>
    %133 = arith.addf %131, %132 : vector<8x16xf32>
    %cst_30 = arith.constant 0.000000e+00 : f32
    %134 = vector.broadcast %cst_30 : f32 to vector<8x16xf32>
    %135 = arith.maximumf %133, %134 : vector<8x16xf32>
    %136 = vector.broadcast %2 : vector<1x16xf32> to vector<8x16xf32>
    %137 = arith.mulf %135, %136 : vector<8x16xf32>
    %138 = vector.extract_strided_slice %137 {offsets = [0, 0], sizes = [8, 8], strides = [1, 1]} : vector<8x16xf32> to vector<8x8xf32>
    %139 = arith.addf %123, %138 : vector<8x8xf32>
    %140 = vector.extract_strided_slice %137 {offsets = [0, 8], sizes = [8, 8], strides = [1, 1]} : vector<8x16xf32> to vector<8x8xf32>
    %141 = arith.addf %139, %140 : vector<8x8xf32>
    %142 = vector.extract_strided_slice %130 {offsets = [0, 16], sizes = [8, 8], strides = [1, 1]} : vector<8x24xf32> to vector<8x8xf32>
    %143 = vector.broadcast %3 : f32 to vector<8x8xf32>
    %144 = arith.cmpf ogt, %141, %143 : vector<8x8xf32>
    %145 = arith.extui %144 : vector<8x8xi1> to vector<8x8xi32>
    %146 = arith.sitofp %145 : vector<8x8xi32> to vector<8x8xf32>
    %147 = arith.mulf %142, %146 : vector<8x8xf32>
    %148 = arith.mulf %147, %147 : vector<8x8xf32>
    %cst_31 = arith.constant dense<0.000000e+00> : vector<8xf32>
    %149 = vector.multi_reduction <add>, %148, %cst_31 [1] : vector<8x8xf32> to vector<8xf32>
    %150 = vector.shape_cast %149 : vector<8xf32> to vector<8x1xf32>
    %cst_32 = arith.constant 1.000000e-24 : f32
    %151 = vector.broadcast %cst_32 : f32 to vector<8x1xf32>
    %152 = arith.maximumf %150, %151 : vector<8x1xf32>
    %153 = tpu.reciprocal %152 {approx = true} : vector<8x1xf32> -> vector<8x1xf32>
    %154 = vector.broadcast %153 : vector<8x1xf32> to vector<8x8xf32>
    %155 = arith.mulf %148, %154 : vector<8x8xf32>
    %156 = arith.addf %119, %155 : vector<8x8xf32>
    %157 = arith.addf %120, %146 : vector<8x8xf32>
    %158 = vector.extract_strided_slice %5 {offsets = [0, 16], sizes = [8, 4], strides = [1, 1]} : vector<8x32xf32> to vector<8x4xf32>
    %159 = vector.extract_strided_slice %7 {offsets = [0, 16], sizes = [8, 4], strides = [1, 1]} : vector<8x32xf32> to vector<8x4xf32>
    %cst_33 = arith.constant 0.000000e+00 : f32
    %160 = vector.broadcast %cst_33 : f32 to vector<8x8xf32>
    %161 = vector.shape_cast %0 : vector<3x4xf32> to vector<3x1x4xf32>
    %162 = vector.shape_cast %159 : vector<8x4xf32> to vector<1x8x4xf32>
    %163 = vector.broadcast %161 : vector<3x1x4xf32> to vector<3x8x4xf32>
    %164 = vector.broadcast %162 : vector<1x8x4xf32> to vector<3x8x4xf32>
    %165 = arith.mulf %163, %164 : vector<3x8x4xf32>
    %166 = vector.shape_cast %165 : vector<3x8x4xf32> to vector<24x4xf32>
    %cst_34 = arith.constant dense<0.000000e+00> : vector<8x24xf32>
    %167 = tpu.matmul %158, %166, %cst_34 {dimension_numbers = #tpu.dot_dimension_numbers<[1], [1], [0], [0], [0, 0, 1, 0], [], []>} : vector<8x4xf32>, vector<24x4xf32>, vector<8x24xf32> -> vector<8x24xf32>
    %168 = vector.extract_strided_slice %167 {offsets = [0, 0], sizes = [8, 16], strides = [1, 1]} : vector<8x24xf32> to vector<8x16xf32>
    %169 = vector.broadcast %1 : vector<1x16xf32> to vector<8x16xf32>
    %170 = arith.addf %168, %169 : vector<8x16xf32>
    %cst_35 = arith.constant 0.000000e+00 : f32
    %171 = vector.broadcast %cst_35 : f32 to vector<8x16xf32>
    %172 = arith.maximumf %170, %171 : vector<8x16xf32>
    %173 = vector.broadcast %2 : vector<1x16xf32> to vector<8x16xf32>
    %174 = arith.mulf %172, %173 : vector<8x16xf32>
    %175 = vector.extract_strided_slice %174 {offsets = [0, 0], sizes = [8, 8], strides = [1, 1]} : vector<8x16xf32> to vector<8x8xf32>
    %176 = arith.addf %160, %175 : vector<8x8xf32>
    %177 = vector.extract_strided_slice %174 {offsets = [0, 8], sizes = [8, 8], strides = [1, 1]} : vector<8x16xf32> to vector<8x8xf32>
    %178 = arith.addf %176, %177 : vector<8x8xf32>
    %179 = vector.extract_strided_slice %167 {offsets = [0, 16], sizes = [8, 8], strides = [1, 1]} : vector<8x24xf32> to vector<8x8xf32>
    %180 = vector.broadcast %3 : f32 to vector<8x8xf32>
    %181 = arith.cmpf ogt, %178, %180 : vector<8x8xf32>
    %182 = arith.extui %181 : vector<8x8xi1> to vector<8x8xi32>
    %183 = arith.sitofp %182 : vector<8x8xi32> to vector<8x8xf32>
    %184 = arith.mulf %179, %183 : vector<8x8xf32>
    %185 = arith.mulf %184, %184 : vector<8x8xf32>
    %cst_36 = arith.constant dense<0.000000e+00> : vector<8xf32>
    %186 = vector.multi_reduction <add>, %185, %cst_36 [1] : vector<8x8xf32> to vector<8xf32>
    %187 = vector.shape_cast %186 : vector<8xf32> to vector<8x1xf32>
    %cst_37 = arith.constant 1.000000e-24 : f32
    %188 = vector.broadcast %cst_37 : f32 to vector<8x1xf32>
    %189 = arith.maximumf %187, %188 : vector<8x1xf32>
    %190 = tpu.reciprocal %189 {approx = true} : vector<8x1xf32> -> vector<8x1xf32>
    %191 = vector.broadcast %190 : vector<8x1xf32> to vector<8x8xf32>
    %192 = arith.mulf %185, %191 : vector<8x8xf32>
    %193 = arith.addf %156, %192 : vector<8x8xf32>
    %194 = arith.addf %157, %183 : vector<8x8xf32>
    %195 = vector.extract_strided_slice %5 {offsets = [0, 20], sizes = [8, 4], strides = [1, 1]} : vector<8x32xf32> to vector<8x4xf32>
    %196 = vector.extract_strided_slice %7 {offsets = [0, 20], sizes = [8, 4], strides = [1, 1]} : vector<8x32xf32> to vector<8x4xf32>
    %cst_38 = arith.constant 0.000000e+00 : f32
    %197 = vector.broadcast %cst_38 : f32 to vector<8x8xf32>
    %198 = vector.shape_cast %0 : vector<3x4xf32> to vector<3x1x4xf32>
    %199 = vector.shape_cast %196 : vector<8x4xf32> to vector<1x8x4xf32>
    %200 = vector.broadcast %198 : vector<3x1x4xf32> to vector<3x8x4xf32>
    %201 = vector.broadcast %199 : vector<1x8x4xf32> to vector<3x8x4xf32>
    %202 = arith.mulf %200, %201 : vector<3x8x4xf32>
    %203 = vector.shape_cast %202 : vector<3x8x4xf32> to vector<24x4xf32>
    %cst_39 = arith.constant dense<0.000000e+00> : vector<8x24xf32>
    %204 = tpu.matmul %195, %203, %cst_39 {dimension_numbers = #tpu.dot_dimension_numbers<[1], [1], [0], [0], [0, 0, 1, 0], [], []>} : vector<8x4xf32>, vector<24x4xf32>, vector<8x24xf32> -> vector<8x24xf32>
    %205 = vector.extract_strided_slice %204 {offsets = [0, 0], sizes = [8, 16], strides = [1, 1]} : vector<8x24xf32> to vector<8x16xf32>
    %206 = vector.broadcast %1 : vector<1x16xf32> to vector<8x16xf32>
    %207 = arith.addf %205, %206 : vector<8x16xf32>
    %cst_40 = arith.constant 0.000000e+00 : f32
    %208 = vector.broadcast %cst_40 : f32 to vector<8x16xf32>
    %209 = arith.maximumf %207, %208 : vector<8x16xf32>
    %210 = vector.broadcast %2 : vector<1x16xf32> to vector<8x16xf32>
    %211 = arith.mulf %209, %210 : vector<8x16xf32>
    %212 = vector.extract_strided_slice %211 {offsets = [0, 0], sizes = [8, 8], strides = [1, 1]} : vector<8x16xf32> to vector<8x8xf32>
    %213 = arith.addf %197, %212 : vector<8x8xf32>
    %214 = vector.extract_strided_slice %211 {offsets = [0, 8], sizes = [8, 8], strides = [1, 1]} : vector<8x16xf32> to vector<8x8xf32>
    %215 = arith.addf %213, %214 : vector<8x8xf32>
    %216 = vector.extract_strided_slice %204 {offsets = [0, 16], sizes = [8, 8], strides = [1, 1]} : vector<8x24xf32> to vector<8x8xf32>
    %217 = vector.broadcast %3 : f32 to vector<8x8xf32>
    %218 = arith.cmpf ogt, %215, %217 : vector<8x8xf32>
    %219 = arith.extui %218 : vector<8x8xi1> to vector<8x8xi32>
    %220 = arith.sitofp %219 : vector<8x8xi32> to vector<8x8xf32>
    %221 = arith.mulf %216, %220 : vector<8x8xf32>
    %222 = arith.mulf %221, %221 : vector<8x8xf32>
    %cst_41 = arith.constant dense<0.000000e+00> : vector<8xf32>
    %223 = vector.multi_reduction <add>, %222, %cst_41 [1] : vector<8x8xf32> to vector<8xf32>
    %224 = vector.shape_cast %223 : vector<8xf32> to vector<8x1xf32>
    %cst_42 = arith.constant 1.000000e-24 : f32
    %225 = vector.broadcast %cst_42 : f32 to vector<8x1xf32>
    %226 = arith.maximumf %224, %225 : vector<8x1xf32>
    %227 = tpu.reciprocal %226 {approx = true} : vector<8x1xf32> -> vector<8x1xf32>
    %228 = vector.broadcast %227 : vector<8x1xf32> to vector<8x8xf32>
    %229 = arith.mulf %222, %228 : vector<8x8xf32>
    %230 = arith.addf %193, %229 : vector<8x8xf32>
    %231 = arith.addf %194, %220 : vector<8x8xf32>
    %232 = vector.extract_strided_slice %5 {offsets = [0, 24], sizes = [8, 4], strides = [1, 1]} : vector<8x32xf32> to vector<8x4xf32>
    %233 = vector.extract_strided_slice %7 {offsets = [0, 24], sizes = [8, 4], strides = [1, 1]} : vector<8x32xf32> to vector<8x4xf32>
    %cst_43 = arith.constant 0.000000e+00 : f32
    %234 = vector.broadcast %cst_43 : f32 to vector<8x8xf32>
    %235 = vector.shape_cast %0 : vector<3x4xf32> to vector<3x1x4xf32>
    %236 = vector.shape_cast %233 : vector<8x4xf32> to vector<1x8x4xf32>
    %237 = vector.broadcast %235 : vector<3x1x4xf32> to vector<3x8x4xf32>
    %238 = vector.broadcast %236 : vector<1x8x4xf32> to vector<3x8x4xf32>
    %239 = arith.mulf %237, %238 : vector<3x8x4xf32>
    %240 = vector.shape_cast %239 : vector<3x8x4xf32> to vector<24x4xf32>
    %cst_44 = arith.constant dense<0.000000e+00> : vector<8x24xf32>
    %241 = tpu.matmul %232, %240, %cst_44 {dimension_numbers = #tpu.dot_dimension_numbers<[1], [1], [0], [0], [0, 0, 1, 0], [], []>} : vector<8x4xf32>, vector<24x4xf32>, vector<8x24xf32> -> vector<8x24xf32>
    %242 = vector.extract_strided_slice %241 {offsets = [0, 0], sizes = [8, 16], strides = [1, 1]} : vector<8x24xf32> to vector<8x16xf32>
    %243 = vector.broadcast %1 : vector<1x16xf32> to vector<8x16xf32>
    %244 = arith.addf %242, %243 : vector<8x16xf32>
    %cst_45 = arith.constant 0.000000e+00 : f32
    %245 = vector.broadcast %cst_45 : f32 to vector<8x16xf32>
    %246 = arith.maximumf %244, %245 : vector<8x16xf32>
    %247 = vector.broadcast %2 : vector<1x16xf32> to vector<8x16xf32>
    %248 = arith.mulf %246, %247 : vector<8x16xf32>
    %249 = vector.extract_strided_slice %248 {offsets = [0, 0], sizes = [8, 8], strides = [1, 1]} : vector<8x16xf32> to vector<8x8xf32>
    %250 = arith.addf %234, %249 : vector<8x8xf32>
    %251 = vector.extract_strided_slice %248 {offsets = [0, 8], sizes = [8, 8], strides = [1, 1]} : vector<8x16xf32> to vector<8x8xf32>
    %252 = arith.addf %250, %251 : vector<8x8xf32>
    %253 = vector.extract_strided_slice %241 {offsets = [0, 16], sizes = [8, 8], strides = [1, 1]} : vector<8x24xf32> to vector<8x8xf32>
    %254 = vector.broadcast %3 : f32 to vector<8x8xf32>
    %255 = arith.cmpf ogt, %252, %254 : vector<8x8xf32>
    %256 = arith.extui %255 : vector<8x8xi1> to vector<8x8xi32>
    %257 = arith.sitofp %256 : vector<8x8xi32> to vector<8x8xf32>
    %258 = arith.mulf %253, %257 : vector<8x8xf32>
    %259 = arith.mulf %258, %258 : vector<8x8xf32>
    %cst_46 = arith.constant dense<0.000000e+00> : vector<8xf32>
    %260 = vector.multi_reduction <add>, %259, %cst_46 [1] : vector<8x8xf32> to vector<8xf32>
    %261 = vector.shape_cast %260 : vector<8xf32> to vector<8x1xf32>
    %cst_47 = arith.constant 1.000000e-24 : f32
    %262 = vector.broadcast %cst_47 : f32 to vector<8x1xf32>
    %263 = arith.maximumf %261, %262 : vector<8x1xf32>
    %264 = tpu.reciprocal %263 {approx = true} : vector<8x1xf32> -> vector<8x1xf32>
    %265 = vector.broadcast %264 : vector<8x1xf32> to vector<8x8xf32>
    %266 = arith.mulf %259, %265 : vector<8x8xf32>
    %267 = arith.addf %230, %266 : vector<8x8xf32>
    %268 = arith.addf %231, %257 : vector<8x8xf32>
    %269 = vector.extract_strided_slice %5 {offsets = [0, 28], sizes = [8, 4], strides = [1, 1]} : vector<8x32xf32> to vector<8x4xf32>
    %270 = vector.extract_strided_slice %7 {offsets = [0, 28], sizes = [8, 4], strides = [1, 1]} : vector<8x32xf32> to vector<8x4xf32>
    %cst_48 = arith.constant 0.000000e+00 : f32
    %271 = vector.broadcast %cst_48 : f32 to vector<8x8xf32>
    %272 = vector.shape_cast %0 : vector<3x4xf32> to vector<3x1x4xf32>
    %273 = vector.shape_cast %270 : vector<8x4xf32> to vector<1x8x4xf32>
    %274 = vector.broadcast %272 : vector<3x1x4xf32> to vector<3x8x4xf32>
    %275 = vector.broadcast %273 : vector<1x8x4xf32> to vector<3x8x4xf32>
    %276 = arith.mulf %274, %275 : vector<3x8x4xf32>
    %277 = vector.shape_cast %276 : vector<3x8x4xf32> to vector<24x4xf32>
    %cst_49 = arith.constant dense<0.000000e+00> : vector<8x24xf32>
    %278 = tpu.matmul %269, %277, %cst_49 {dimension_numbers = #tpu.dot_dimension_numbers<[1], [1], [0], [0], [0, 0, 1, 0], [], []>} : vector<8x4xf32>, vector<24x4xf32>, vector<8x24xf32> -> vector<8x24xf32>
    %279 = vector.extract_strided_slice %278 {offsets = [0, 0], sizes = [8, 16], strides = [1, 1]} : vector<8x24xf32> to vector<8x16xf32>
    %280 = vector.broadcast %1 : vector<1x16xf32> to vector<8x16xf32>
    %281 = arith.addf %279, %280 : vector<8x16xf32>
    %cst_50 = arith.constant 0.000000e+00 : f32
    %282 = vector.broadcast %cst_50 : f32 to vector<8x16xf32>
    %283 = arith.maximumf %281, %282 : vector<8x16xf32>
    %284 = vector.broadcast %2 : vector<1x16xf32> to vector<8x16xf32>
    %285 = arith.mulf %283, %284 : vector<8x16xf32>
    %286 = vector.extract_strided_slice %285 {offsets = [0, 0], sizes = [8, 8], strides = [1, 1]} : vector<8x16xf32> to vector<8x8xf32>
    %287 = arith.addf %271, %286 : vector<8x8xf32>
    %288 = vector.extract_strided_slice %285 {offsets = [0, 8], sizes = [8, 8], strides = [1, 1]} : vector<8x16xf32> to vector<8x8xf32>
    %289 = arith.addf %287, %288 : vector<8x8xf32>
    %290 = vector.extract_strided_slice %278 {offsets = [0, 16], sizes = [8, 8], strides = [1, 1]} : vector<8x24xf32> to vector<8x8xf32>
    %291 = vector.broadcast %3 : f32 to vector<8x8xf32>
    %292 = arith.cmpf ogt, %289, %291 : vector<8x8xf32>
    %293 = arith.extui %292 : vector<8x8xi1> to vector<8x8xi32>
    %294 = arith.sitofp %293 : vector<8x8xi32> to vector<8x8xf32>
    %295 = arith.mulf %290, %294 : vector<8x8xf32>
    %296 = arith.mulf %295, %295 : vector<8x8xf32>
    %cst_51 = arith.constant dense<0.000000e+00> : vector<8xf32>
    %297 = vector.multi_reduction <add>, %296, %cst_51 [1] : vector<8x8xf32> to vector<8xf32>
    %298 = vector.shape_cast %297 : vector<8xf32> to vector<8x1xf32>
    %cst_52 = arith.constant 1.000000e-24 : f32
    %299 = vector.broadcast %cst_52 : f32 to vector<8x1xf32>
    %300 = arith.maximumf %298, %299 : vector<8x1xf32>
    %301 = tpu.reciprocal %300 {approx = true} : vector<8x1xf32> -> vector<8x1xf32>
    %302 = vector.broadcast %301 : vector<8x1xf32> to vector<8x8xf32>
    %303 = arith.mulf %296, %302 : vector<8x8xf32>
    %304 = arith.addf %267, %303 : vector<8x8xf32>
    %305 = arith.addf %268, %294 : vector<8x8xf32>
    %cst_53 = arith.constant 1.250000e-01 : f32
    %306 = vector.broadcast %cst_53 : f32 to vector<8x8xf32>
    %307 = arith.mulf %305, %306 : vector<8x8xf32>
    %c0_54 = arith.constant 0 : index
    %c0_55 = arith.constant 0 : index
    %c0_56 = arith.constant 0 : index
    %308 = vector.load %arg7[%c0_54, %c0_55, %c0_56] : memref<1x8x8xf32, #tpu.memory_space<vmem>>, vector<1x8x8xf32>
    %309 = vector.shape_cast %308 : vector<1x8x8xf32> to vector<8x8xf32>
    %310 = vector.shape_cast %307 : vector<8x8xf32> to vector<1x8x8xf32>
    tpu.vector_store %arg7[%c0_54, %c0_55, %c0_56], %310 {strides = array<i32>} : memref<1x8x8xf32, #tpu.memory_space<vmem>>, vector<1x8x8xf32>,
    %cst_57 = arith.constant 1.250000e-01 : f32
    %311 = vector.broadcast %cst_57 : f32 to vector<8x8xf32>
    %312 = arith.mulf %304, %311 : vector<8x8xf32>
    %c0_58 = arith.constant 0 : index
    %c0_59 = arith.constant 0 : index
    %c0_60 = arith.constant 0 : index
    %313 = vector.load %arg8[%c0_58, %c0_59, %c0_60] : memref<1x8x8xf32, #tpu.memory_space<vmem>>, vector<1x8x8xf32>
    %314 = vector.shape_cast %313 : vector<1x8x8xf32> to vector<8x8xf32>
    %315 = vector.shape_cast %312 : vector<8x8xf32> to vector<1x8x8xf32>
    tpu.vector_store %arg8[%c0_58, %c0_59, %c0_60], %315 {strides = array<i32>} : memref<1x8x8xf32, #tpu.memory_space<vmem>>, vector<1x8x8xf32>,
    return
  }
  func.func @transform_0(%arg0: i32) -> (i32, i32, i32) {
    %c0_i32 = arith.constant 0 : i32
    %c0_i32_0 = arith.constant 0 : i32
    %c0_i32_1 = arith.constant 0 : i32
    return %arg0, %c0_i32, %c0_i32_0 : i32, i32, i32
  }
  func.func @transform_1(%arg0: i32) -> (i32, i32, i32) {
    %c0_i32 = arith.constant 0 : i32
    %c0_i32_0 = arith.constant 0 : i32
    %c0_i32_1 = arith.constant 0 : i32
    return %arg0, %c0_i32, %c0_i32_0 : i32, i32, i32
  }
  func.func @transform_2(%arg0: i32) -> (i32, i32) {
    %c0_i32 = arith.constant 0 : i32
    %c0_i32_0 = arith.constant 0 : i32
    %c0_i32_1 = arith.constant 0 : i32
    return %c0_i32, %c0_i32_0 : i32, i32
  }
  func.func @transform_3(%arg0: i32) -> (i32, i32) {
    %c0_i32 = arith.constant 0 : i32
    %c0_i32_0 = arith.constant 0 : i32
    %c0_i32_1 = arith.constant 0 : i32
    return %c0_i32, %c0_i32_0 : i32, i32
  }
  func.func @transform_4(%arg0: i32) -> (i32, i32) {
    %c0_i32 = arith.constant 0 : i32
    %c0_i32_0 = arith.constant 0 : i32
    %c0_i32_1 = arith.constant 0 : i32
    return %c0_i32, %c0_i32_0 : i32, i32
  }
  func.func @transform_5(%arg0: i32) -> i32 {
    %c0_i32 = arith.constant 0 : i32
    %c0_i32_0 = arith.constant 0 : i32
    return %c0_i32 : i32
  }
  func.func @transform_6(%arg0: i32) -> (i32, i32, i32) {
    %c0_i32 = arith.constant 0 : i32
    %c0_i32_0 = arith.constant 0 : i32
    %c0_i32_1 = arith.constant 0 : i32
    return %arg0, %c0_i32, %c0_i32_0 : i32, i32, i32
  }
  func.func @transform_7(%arg0: i32) -> (i32, i32, i32) {
    %c0_i32 = arith.constant 0 : i32
    %c0_i32_0 = arith.constant 0 : i32
    %c0_i32_1 = arith.constant 0 : i32
    return %arg0, %c0_i32, %c0_i32_0 : i32, i32, i32
  }
}

</mosaic_0001>

<bundles_post_ra>
// kernel: tpu_custom_call.1
= control target key start
LH: loop header
LB: loop body
LE: loop exit
PB: predicated region body
PF: predicated region fallthrough
CT: control target
= control target key end

     0   :  { %s2441_s0 = inlined_call_operand.hbm [shape: f32[2,8,32], index: 0, kind: input, shape index: {}]   ;;  %s2442_s1 = inlined_call_operand.hbm [shape: f32[2,8,32], index: 1, kind: input, shape index: {}]   ;;  %s2443_s2 = inlined_call_operand.vmem [shape: f32[3,4], index: 2, kind: input, shape index: {}]   ;;  %s2444_s3 = inlined_call_operand.vmem [shape: f32[1,16], index: 3, kind: input, shape index: {}]   ;;  %s2445_s4 = inlined_call_operand.vmem [shape: f32[1,16], index: 4, kind: input, shape index: {}]   ;;  %s2446_s5 = inlined_call_operand.<no memory space> [shape: f32[1], index: 5, kind: input, shape index: {}]   ;;  %s2447_s6 = inlined_call_operand.hbm [shape: f32[2,8,8], index: 6, kind: output, shape index: {0}]   ;;  %s2448_s7 = inlined_call_operand.hbm [shape: f32[2,8,8], index: 7, kind: output, shape index: {1}]  }
   0x1   :  { %13 = sst [smem:[#allocation2]] %s2446_s5 }
   0x2   :  { %14 = vsyncpa [#allocation4], 0 }
   0x3   :  { %16 = vsyncpa [#allocation4 + $0x1], 0 }
   0x4   :  { %17 = vsyncpa [#allocation7], 0 }
   0x5   :  { %19 = vsyncpa [#allocation7 + $0x1], 0 }
   0x6   :  { %20 = vsyncpa [#allocation5], 0 }
   0x7   :  { %22 = vsyncpa [#allocation5 + $0x1], 0 }
   0x8   :  { %23 = vsyncpa [#allocation10], 0 }
   0x9   :  { %25 = vsyncpa [#allocation10 + $0x1], 0  ;;  %s1984_s26 = smov 0   ;;  %s1986_s27 = smov 0  }
   0xa   :  { %s1988_s28 = smov 0   ;;  %s1990_s29 = smov 0  }
   0xb LB: > { %s2005_s5 = sadd.s32 4294967295, %s1924_s29   ;;  %s1517_s30 = sadd.s32 4294967294, %s1924_s29   ;;  %s1924_s29 = sphi %s1990_s29, %s2471_s29   ;;  %s1920_s28 = sphi %s1988_s28, %s2470_s28   ;;  %s1916_s27 = sphi %s1986_s27, %s2469_s27   ;;  %s1912_s26 = sphi %s1984_s26, %s2468_s26  }
   0xc   : > { %s2009_s8 = sadd.s32 1, %s1924_s29   ;;  %s38_s9 = sadd.s32 1, %s1920_s28 }
   0xd   : > { %s35_s10 = ssub.s32 %s1924_s29, %s2009_s8  ;;  %p45_p0 = scmp.ne.s32.totalorder %s1920_s28, %s1916_s27 }
   0xe   : > { %p36_p1 = scmp.eq.s32.totalorder %s35_s10, 0  ;;  %p46_p2 = scmp.eq.s32.totalorder %s1924_s29, 0 }
   0xf   : > { %p51_p3 = scmp.ne.s32.totalorder %s1916_s27, %s1912_s26  ;;  %p52_p4 = scmp.eq.s32.totalorder %s2005_s5, 0 }
  0x10   : > { %s2021_s11 = scalar_select %p36_p1, %s1920_s28, %s38_s9  }
  0x11   : > { %p2023_p5 = por %p46_p2, %p45_p0  ;;  %p2027_p6 = por %p52_p4, %p51_p3 }
  0x12   : > { %p185_p7 = scmp.eq.s32.totalorder %s2005_s5, 1  ;;  %p191_p8 = scmp.eq.s32.totalorder %s1517_s30, 1 }
  0x13   : > { %s2454_s13 = scalar_select %p2027_p6, 1, 0 }
  0x14   : > { %p1704_p10 = scmp.lt.s32.totalorder %s1924_s29, 2  ;;  %p2034_p11 = por %p185_p7, %p45_p0 }
  0x15   : > { %p2038_p12 = por %p191_p8, %p51_p3  ;;  %s2043_s16 = sand.u32 1, %s1920_s28  }
  0x16   : > { %s2455_s14 = scalar_select %p2034_p11, 1, 0 }
  0x17   : > { %s2456_s15 = scalar_select %p2038_p12, 1, 0 }
  0x18   : > { %s1521_s17 = sshll.u32 %s1924_s29, 7  ;;  %s2449_s18 = sshll.u32 %s2043_s16, 3 }
  0x19   : > { %s2052_s21 = scalar_lea.hbm %s2441_s0, %s1521_s17  ;;  %s253_s22 = scalar_lea.vmem [#allocation3], %s2449_s18 }
  0x1a   : > { %s260_s23 = sshll.u32 %s253_s22, 4  ;;  %p2058_p13 = pnand %p1704_p10, %p2023_p5  ;;  %s2062_s23 = int_to_ptr.vmem [resolvable:$true] %s260_s23 }
  0x1b   : > { %s250_s25 = scalar_lea.sflag [#allocation4], %s2043_s16  ;;  %s1770_s30 = scalar_lea.hbm %s2052_s21, 128 }
  0x1c   : > { %p1771_p2 = scmp.ne.s32.totalorder %s2052_s21, %s1770_s30  ;;  %p1772_p3 = pneg %p2058_p13 }
  0x1d   : > { %s1775_s12 = scalar_lea.hbm %s2441_s0, 256  ;;  %p1776_p5 = scmp.lt.s32.totalorder %s2052_s21, %s2441_s0 }
  0x1e   : > { %p1773_p4 = pnand %p1772_p3, %p1771_p2  ;;  %p1777_p8 = scmp.lt.s32.totalorder %s1775_s12, %s1770_s30 }
  0x20   : > { %p1774_p7 = pneg %p1773_p4  ;;  %p1778_p10 = por %p1777_p8, %p1776_p5 }
  0x22   : > { %p1779_p9 = pnand %p1778_p10, %p1774_p7 }
  0x24   : > { %1782 = shalt.err (!%p1779_p9)
}
  0x25   : > { %s1783_s22 = scalar_lea.vmem %s2062_s23, 128  ;;  %s1926_s9 = smov [#allocation3]  }
  0x26   : > { %p1784_p0 = scmp.ne.s32.totalorder %s2062_s23, %s1783_s22  ;;  %s1788_s10 = sshll.u32 %s1926_s9, 4  ;;  %s1789_s10 = int_to_ptr.vmem [resolvable:$false] %s1788_s10 }
  0x27   : > { %s1790_s18 = scalar_lea.vmem %s1789_s10, 256  ;;  %p1791_p1 = scmp.lt.s32.totalorder %s2062_s23, %s1789_s10 }
  0x28   : > { %p1786_p2 = pnand %p1784_p0, %p1772_p3  ;;  %p1792_p12 = scmp.lt.s32.totalorder %s1790_s18, %s1783_s22 }
  0x2a   : > { %p1787_p4 = pneg %p1786_p2  ;;  %p1793_p11 = por %p1792_p12, %p1791_p1 }
  0x2c   : > { %p1794_p5 = pnand %p1793_p11, %p1787_p4 }
  0x2e   : > { %1797 = shalt.err (!%p1794_p5)
}
  0x2f   : > { %1693 = dma.hbm_to_vmem [thread:$0]  (!%p2058_p13), %s2052_s21, 128, %s2062_s23, %s250_s25  }
  0x30   : > { %p2458_p9 = scmp.lt.s32.totalorder %s1924_s29, 3  ;;  %p2459_p0 = scmp.ge.s32.totalorder %s1924_s29, 1 }
  0x31   : > { %s2104_s19 = scalar_lea.hbm %s2442_s1, %s1521_s17  ;;  %s2461_s20 = sshll.u32 %s2043_s16, 3 }
  0x32   : > { %p2095_p7 = pnand %p2459_p0, %p2458_p9  ;;  %s271_s22 = scalar_lea.vmem [#allocation6], %s2461_s20 }
  0x33   : > { %s278_s9 = sshll.u32 %s271_s22, 4  ;;  %s268_s21 = scalar_lea.sflag [#allocation7], %s2043_s16  ;;  %s279_s9 = int_to_ptr.vmem [resolvable:$true] %s278_s9 }
  0x34   : > { %s2460_s30 = scalar_select %p2095_p7, 1, 0 }
  0x35   : > { %s1798_s23 = scalar_lea.hbm %s2104_s19, 128  ;;  %s1803_s18 = scalar_lea.hbm %s2442_s1, 256 }
  0x36   : > { %p1799_p11 = scmp.ne.s32.totalorder %s2104_s19, %s1798_s23  ;;  %p1804_p8 = scmp.lt.s32.totalorder %s2104_s19, %s2442_s1 }
  0x37   : > { %p1805_p10 = scmp.lt.s32.totalorder %s1803_s18, %s1798_s23 }
  0x38   : > { %p1801_p12 = pnand %p1799_p11, %p1772_p3 }
  0x39   : > { %p1806_p2 = por %p1805_p10, %p1804_p8 }
  0x3a   : > { %p1802_p1 = pneg %p1801_p12 }
  0x3c   : > { %p1807_p4 = pnand %p1806_p2, %p1802_p1 }
  0x3e   : > { %1810 = shalt.err (!%p1807_p4)
}
  0x3f   : > { %s1811_s20 = scalar_lea.vmem %s279_s9, 128  ;;  %s1927_s16 = smov [#allocation6]  }
  0x40   : > { %p1812_p5 = scmp.ne.s32.totalorder %s279_s9, %s1811_s20  ;;  %s1816_s22 = sshll.u32 %s1927_s16, 4  ;;  %s1817_s22 = int_to_ptr.vmem [resolvable:$false] %s1816_s22 }
  0x41   : > { %s1818_s25 = scalar_lea.vmem %s1817_s22, 256  ;;  %p1819_p11 = scmp.lt.s32.totalorder %s279_s9, %s1817_s22 }
  0x42   : > { %p1814_p9 = pnand %p1812_p5, %p1772_p3  ;;  %p1820_p12 = scmp.lt.s32.totalorder %s1818_s25, %s1811_s20 }
  0x44   : > { %p1815_p0 = pneg %p1814_p9  ;;  %p1821_p6 = por %p1820_p12, %p1819_p11 }
  0x46   : > { %p1822_p7 = pnand %p1821_p6, %p1815_p0 }
  0x48   : > { %1825 = shalt.err (!%p1822_p7)
}
  0x49   : > { %1696 = dma.hbm_to_vmem [thread:$0]  (!%p2058_p13), %s2104_s19, 128, %s279_s9, %s268_s21  }
  0x4a   : > { %p2462_p1 = scmp.ne.s32.totalorder %s2460_s30, 0 }
  0x4b   : > { %s2130_s23 = sand.u32 (!%p2462_p1), 1, %s1916_s27   ;;  %p2463_p6 = scmp.ne.s32.totalorder (!%p2462_p1), %s2454_s13, 0 }
  0x4c   : > { %287 = sbr.rel (%p2462_p1) target bundleno = 1098 (0x44a), region = 44  ;;  %s2133_s10 = sshll.u32 (!%p2462_p1), %s2130_s23, 3 }
  0x4d   : > { %s290_s18 = scalar_lea.sflag (!%p2462_p1), [#allocation4], %s2130_s23  ;;  %s293_s17 = scalar_lea.vmem (!%p2462_p1), [#allocation3], %s2133_s10 }
  0x51   : > { %1895 = dma.done.wait (%p2463_p6), %s290_s18, 128  }
  0x52   : > { %1897 = vsyncadd (%p2463_p6), %s290_s18, 4294967168  ;;  %s299_s24 = scalar_lea.sflag [#allocation7], %s2130_s23  ;;  %s302_s30 = scalar_lea.vmem [#allocation6], %s2133_s10 }
  0x53   : > { %1899 = dma.done.wait (%p2463_p6), %s299_s24, 128  }
  0x54   : > { %1901 = vsyncadd (%p2463_p6), %s299_s24, 4294967168  ;;  %v361_v0 = vlaneseq  ;;  %v1928_v1 = vmov 0.0   ;;  %v1929_v2 = vmov 1966171168   ;;  %vm1930_vm0 = vmmov 0   ;;  %v348_v7 = vld [vmem:[%s302_s30] sm:$0xff] }
  0x55   : > { %1610 = vmatprep.subr.mxu0 %v1928_v1  ;;  %v359_v3 = vunpack.c.l.s4 %v1929_v2  ;;  %1619 = vmatprep.subr.mxu1 %v1928_v1  ;;  %v1529_v8 = vld.sshfl [vmem:[%s2443_s2] sm:$0x13 pattern:$0x75316420]  ;;  %s1931_s9 = smov 124   ;;  %s1932_s21 = smov 116  }
  0x56   : > { %v362_v4 = vshrl.u32 %v361_v0, 7  ;;  %1616 = vmatprep.mubr.msk.f32.mxu0 %vm1930_vm0, %v1928_v1  ;;  %1625 = vmatprep.mubr.msk.f32.mxu1 %vm1930_vm0, %v1928_v1  ;;  %v357_v9 = vcombine.high %v1529_v8, %v1529_v8  ;;  %v347_v12 = vld [vmem:[%s293_s17] sm:$0xff]  ;;  %s1933_s12 = smov 120   ;;  %vm391_vm1 = vcmask 31744   ;;  %s1934_s20 = smov 112   ;;  %vm509_vm10 = vcmask 64512  }
  0x57   : > { %v360_v5 = vunpack.c.0.s8 %v359_v3  ;;  %519 = vrot.lane.b32.xlu0 %v348_v7, %s1931_s9  ;;  %757 = vrot.lane.b32.xlu1 %v348_v7, %s1932_s21  ;;  %s1935_s16 = smov 108   ;;  %s1936_s22 = smov 104   ;;  %v1534_v56 = vld [vmem:[%s2444_s3] ss:$0 sm:$0xff] }
  0x58   : > { %v375_v11 = vsub.s32 0, %v362_v4  ;;  %s1937_s25 = smov 100   ;;  %v1535_v59 = vld [vmem:[%s2445_s4] ss:$0 sm:$0xff]  ;;  %s346_s13 = sld [smem:[#allocation2]] }
  0x59   : > { %v363_v6 = vsub.s32 %v360_v5, %v362_v4  ;;  %s1938_s19 = smov 16   ;;  %s1361_s18 = scalar_lea.sflag [#allocation5], %s2130_s23 }
  0x5a   : > { %p2464_p3 = scmp.ne.s32.totalorder %s2455_s14, 0  ;;  %s1939_s24 = smov [#allocation8]  }
  0x5b   : > { %v364_v10 = vrot.slane %v1529_v8, %v363_v6  ;;  %v371_v14 = vrot.slane %v357_v9, %v363_v6  ;;  %638 = vrot.lane.b32.xlu0 %v348_v7, %s1933_s12  ;;  %525 = vrot.lane.b32.xlu1 %v347_v12, %s1931_s9  ;;  %s335_s9 = scalar_lea.vmem [#allocation8], %s2133_s10  ;;  %s1830_s30 = sshll.u32 %s1939_s24, 4  ;;  %s1831_s30 = int_to_ptr.vmem [resolvable:$false] %s1830_s30 }
  0x5d   : > { %v372_v13 = vcombine.high %v364_v10, %v364_v10  ;;  %v2159_v16 = vrot.slane %v371_v14, %v375_v11  ;;  %v2165_v19 = vrot.slane %v364_v10, %v375_v11 }
  0x5f   : > { %v2157_v15 = vrot.slane %v372_v13, %v375_v11  ;;  %v389_v18 = vmul.f32 %v2159_v16, %v348_v7  ;;  %876 = vrot.lane.b32.xlu0 %v348_v7, %s1934_s20  ;;  %644 = vrot.lane.b32.xlu1 %v347_v12, %s1933_s12  ;;  %v388_v20 = vmul.f32 %v2165_v19, %v348_v7 }
  0x61   : > { %v390_v17 = vmul.f32 %v2157_v15, %v348_v7 }
  0x63   : > { %1611 = vmatpush3.xpose.msk.msra.mxu0 %vm391_vm1, %v390_v17  ;;  %995 = vrot.lane.b32.xlu0 %v348_v7, %s1935_s16 }
  0x64   : > { %1612 = vmatprep.subr.mxu0 %v1928_v1  ;;  %763 = vrot.lane.b32.xlu1 %v347_v12, %s1932_s21  ;;  %s2452_s21 = sshll.u32 %s2005_s5, 7 }
  0x67   : > { %1613 = vmatpush3.xpose.msk.msra.mxu0 %vm391_vm1, %v389_v18  ;;  %1114 = vrot.lane.b32.xlu0 %v348_v7, %s1936_s22 }
  0x68   : > { %1614 = vmatprep.subr.mxu0 %v1928_v1  ;;  %882 = vrot.lane.b32.xlu1 %v347_v12, %s1934_s20 }
  0x6b   : > { %1615 = vmatpush3.xpose.msk.msra.mxu0 %vm391_vm1, %v388_v20  ;;  %1233 = vrot.lane.b32.xlu0 %v348_v7, %s1937_s25 }
  0x6c   : > { %1628 = vmatprep.subr.mxu0 %v1928_v1  ;;  %1001 = vrot.lane.b32.xlu1 %v347_v12, %s1935_s16 }
  0x6e   : > { %1617 = vmatmul.mubr.msk.f32.vlgmr.msra.gmra.mxu0 %vm391_vm1, %v347_v12 }
  0x6f   : > { %1634 = vmatprep.mubr.msk.f32.mxu0 %vm1930_vm0, %v1928_v1  ;;  %1120 = vrot.lane.b32.xlu0 %v347_v12, %s1936_s22  ;;  %s2373_s22 = scalar_lea.hbm %s2447_s6, %s2452_s21 }
  0x70   : > { %1239 = vrot.lane.b32.xlu1 %v347_v12, %s1937_s25  ;;  %s1379_s25 = sshll.u32 %s335_s9, 4  ;;  %s1380_s25 = int_to_ptr.vmem [resolvable:$true] %s1379_s25 }
  0x71   : > { %s1826_s17 = scalar_lea.vmem %s1380_s25, 128  ;;  %p1833_p10 = scmp.lt.s32.totalorder %s1380_s25, %s1831_s30 }
  0x72   : > { %p1827_p13 = scmp.ne.s32.totalorder %s1380_s25, %s1826_s17 }
  0x74   : > { %p1828_p7 = pnand %p1827_p13, %p2464_p3 }
  0x76   : > { %p1829_p8 = pneg %p1828_p7 }
  0xc9   : > { %v520_v21 = vpop.permute.xlu0 %519  ;;  %v758_v23 = vpop.permute.xlu1 %757 }
  0xca   : > { %v524_v22 = vmul.f32 %v520_v21, %v2157_v15  ;;  %v523_v25 = vmul.f32 %v520_v21, %v2159_v16  ;;  %v522_v28 = vmul.f32 %v520_v21, %v2165_v19  ;;  %v762_v32 = vmul.f32 %v758_v23, %v2157_v15 }
  0xcb   : > { %v761_v35 = vmul.f32 %v758_v23, %v2159_v16  ;;  %v760_v38 = vmul.f32 %v758_v23, %v2165_v19 }
  0xcc   : > { %1620 = vmatpush3.xpose.msk.msra.mxu1 %vm391_vm1, %v524_v22 }
  0xcd   : > { %v639_v24 = vpop.permute.xlu0 %638  ;;  %1621 = vmatprep.subr.mxu1 %v1928_v1  ;;  %v526_v29 = vpop.permute.xlu1 %525 }
  0xce   : > { %v643_v26 = vmul.f32 %v639_v24, %v2157_v15  ;;  %v642_v27 = vmul.f32 %v639_v24, %v2159_v16  ;;  %v641_v31 = vmul.f32 %v639_v24, %v2165_v19 }
  0xd0   : > { %1622 = vmatpush3.xpose.msk.msra.mxu1 %vm391_vm1, %v523_v25  ;;  %1629 = vmatpush3.xpose.msk.msra.mxu0 %vm391_vm1, %v643_v26 }
  0xd1   : > { %1623 = vmatprep.subr.mxu1 %v1928_v1  ;;  %1630 = vmatprep.subr.mxu0 %v1928_v1  ;;  %v877_v30 = vpop.permute.xlu0 %876  ;;  %v645_v34 = vpop.permute.xlu1 %644 }
  0xd2   : > { %v881_v33 = vmul.f32 %v877_v30, %v2157_v15  ;;  %v880_v37 = vmul.f32 %v877_v30, %v2159_v16  ;;  %v879_v42 = vmul.f32 %v877_v30, %v2165_v19 }
  0xd4   : > { %1624 = vmatpush3.xpose.msk.msra.mxu1 %vm391_vm1, %v522_v28  ;;  %1631 = vmatpush3.xpose.msk.msra.mxu0 %vm391_vm1, %v642_v27 }
  0xd5   : > { %1632 = vmatprep.subr.mxu0 %v1928_v1  ;;  %1637 = vmatprep.subr.mxu1 %v1928_v1  ;;  %v996_v36 = vpop.permute.xlu0 %995 }
  0xd6   : > { %v764_v39 = vpop.permute.xlu1 %763  ;;  %v1000_v40 = vmul.f32 %v996_v36, %v2157_v15  ;;  %v999_v45 = vmul.f32 %v996_v36, %v2159_v16  ;;  %v998_v48 = vmul.f32 %v996_v36, %v2165_v19 }
  0xd7   : > { %1626 = vmatmul.mubr.msk.f32.vlgmr.msra.gmra.mxu1 %vm391_vm1, %v526_v29 }
  0xd8   : > { %1633 = vmatpush3.xpose.msk.msra.mxu0 %vm391_vm1, %v641_v31  ;;  %1638 = vmatpush3.xpose.msk.msra.mxu1 %vm391_vm1, %v762_v32 }
  0xd9   : > { %1639 = vmatprep.subr.mxu1 %v1928_v1  ;;  %1646 = vmatprep.subr.mxu0 %v1928_v1  ;;  %v1115_v41 = vpop.permute.xlu0 %1114 }
  0xda   : > { %1643 = vmatprep.mubr.msk.f32.mxu1 %vm1930_vm0, %v1928_v1  ;;  %v1119_v43 = vmul.f32 %v1115_v41, %v2157_v15  ;;  %v883_v44 = vpop.permute.xlu1 %882  ;;  %v1118_v46 = vmul.f32 %v1115_v41, %v2159_v16  ;;  %v1117_v51 = vmul.f32 %v1115_v41, %v2165_v19 }
  0xdb   : > { %1635 = vmatmul.mubr.msk.f32.vlgmr.msra.gmra.mxu0 %vm391_vm1, %v645_v34 }
  0xdc   : > { %1640 = vmatpush3.xpose.msk.msra.mxu1 %vm391_vm1, %v761_v35  ;;  %1647 = vmatpush3.xpose.msk.msra.mxu0 %vm391_vm1, %v881_v33 }
  0xdd   : > { %1641 = vmatprep.subr.mxu1 %v1928_v1  ;;  %1648 = vmatprep.subr.mxu0 %v1928_v1  ;;  %v1234_v47 = vpop.permute.xlu0 %1233 }
  0xde   : > { %1652 = vmatprep.mubr.msk.f32.mxu0 %vm1930_vm0, %v1928_v1  ;;  %v1238_v49 = vmul.f32 %v1234_v47, %v2157_v15  ;;  %v1002_v50 = vpop.permute.xlu1 %1001  ;;  %v1237_v53 = vmul.f32 %v1234_v47, %v2159_v16  ;;  %v1236_v54 = vmul.f32 %v1234_v47, %v2165_v19 }
  0xe0   : > { %1642 = vmatpush3.xpose.msk.msra.mxu1 %vm391_vm1, %v760_v38  ;;  %1649 = vmatpush3.xpose.msk.msra.mxu0 %vm391_vm1, %v880_v37  ;;  %v495_v37 = vstv %s346_s13  ;;  %s1832_s13 = scalar_lea.vmem %s1831_s30, 256 }
  0xe1   : > { %1650 = vmatprep.subr.mxu0 %v1928_v1  ;;  %1655 = vmatprep.subr.mxu1 %v1928_v1  ;;  %v1121_v52 = vpop.permute.xlu0 %1120  ;;  %p1834_p2 = scmp.lt.s32.totalorder %s1832_s13, %s1826_s17 }
  0xe2   : > { %v1240_v55 = vpop.permute.xlu1 %1239 }
  0xe3   : > { %1644 = vmatmul.mubr.msk.f32.vlgmr.msra.gmra.mxu1 %vm391_vm1, %v764_v39  ;;  %p1835_p4 = por %p1834_p2, %p1833_p10 }
  0xe4   : > { %1651 = vmatpush3.xpose.msk.msra.mxu0 %vm391_vm1, %v879_v42  ;;  %1656 = vmatpush3.xpose.msk.msra.mxu1 %vm391_vm1, %v1000_v40 }
  0xe5   : > { %1657 = vmatprep.subr.mxu1 %v1928_v1  ;;  %1664 = vmatprep.subr.mxu0 %v1928_v1  ;;  %p1836_p5 = pnand %p1835_p4, %p1829_p8 }
  0xe6   : > { %1661 = vmatprep.mubr.msk.f32.mxu1 %vm1930_vm0, %v1928_v1 }
  0xe7   : > { %1653 = vmatmul.mubr.msk.f32.vlgmr.msra.gmra.mxu0 %vm391_vm1, %v883_v44 }
  0xe8   : > { %1658 = vmatpush3.xpose.msk.msra.mxu1 %vm391_vm1, %v999_v45  ;;  %1665 = vmatpush3.xpose.msk.msra.mxu0 %vm391_vm1, %v1119_v43 }
  0xe9   : > { %1659 = vmatprep.subr.mxu1 %v1928_v1  ;;  %1666 = vmatprep.subr.mxu0 %v1928_v1 }
  0xea   : > { %1670 = vmatprep.mubr.msk.f32.mxu0 %vm1930_vm0, %v1928_v1 }
  0xec   : > { %1660 = vmatpush3.xpose.msk.msra.mxu1 %vm391_vm1, %v998_v48  ;;  %1667 = vmatpush3.xpose.msk.msra.mxu0 %vm391_vm1, %v1118_v46 }
  0xed   : > { %1668 = vmatprep.subr.mxu0 %v1928_v1  ;;  %1673 = vmatprep.subr.mxu1 %v1928_v1 }
  0xef   : > { %1662 = vmatmul.mubr.msk.f32.vlgmr.msra.gmra.mxu1 %vm391_vm1, %v1002_v50 }
  0xf0   : > { %1669 = vmatpush3.xpose.msk.msra.mxu0 %vm391_vm1, %v1117_v51  ;;  %1674 = vmatpush3.xpose.msk.msra.mxu1 %vm391_vm1, %v1238_v49 }
  0xf1   : > { %1675 = vmatprep.subr.mxu1 %v1928_v1  ;;  %1679 = vmatprep.mubr.msk.f32.mxu1 %vm1930_vm0, %v1928_v1 }
  0xf3   : > { %1671 = vmatmul.mubr.msk.f32.vlgmr.msra.gmra.mxu0 %vm391_vm1, %v1121_v52 }
  0xf4   : > { %1676 = vmatpush3.xpose.msk.msra.mxu1 %vm391_vm1, %v1237_v53 }
  0xf5   : > { %1677 = vmatprep.subr.mxu1 %v1928_v1 }
  0xf8   : > { %1678 = vmatpush3.xpose.msk.msra.mxu1 %vm391_vm1, %v1236_v54 }
  0xfb   : > { %1680 = vmatmul.mubr.msk.f32.vlgmr.msra.gmra.mxu1 %vm391_vm1, %v1240_v55 }
 0x12e   : > { %v2259_v57 = vpop.f32.mrf.mxu0 }
 0x12f   : > { %v480_v58 = vadd.f32 %v1534_v56, %v2259_v57 }
 0x130   : > { %v1618_v60 = vpop.f32.mrf.mxu0 }
 0x131   : > { %v481_v61 = vmax.f32 %v480_v58, 0.0 }
 0x133   : > { %v488_v62 = vmul.f32 %v1535_v59, %v481_v61 }
 0x135   : > { %491 = vrot.lane.b32.xlu0 %v488_v62, %s1933_s12 }
 0x197   : > { %v2266_v63 = vpop.f32.mrf.mxu1 }
 0x198   : > { %v608_v0 = vadd.f32 %v1534_v56, %v2266_v63 }
 0x199   : > { %v1627_v2 = vpop.f32.mrf.mxu1 }
 0x19a   : > { %v609_v3 = vmax.f32 %v608_v0, 0.0 }
 0x19b   : > { %v2269_v4 = vpop.f32.mrf.mxu0 }
 0x19c   : > { %v727_v5 = vadd.f32 %v1534_v56, %v2269_v4  ;;  %v610_v6 = vmul.f32 %v1535_v59, %v609_v3 }
 0x19d   : > { %v1636_v7 = vpop.f32.mrf.mxu0 }
 0x19e   : > { %v728_v8 = vmax.f32 %v727_v5, 0.0  ;;  %613 = vrot.lane.b32.xlu1 %v610_v6, %s1933_s12 }
 0x1a0   : > { %v729_v9 = vmul.f32 %v1535_v59, %v728_v8 }
 0x1a2   : > { %732 = vrot.lane.b32.xlu0 %v729_v9, %s1933_s12 }
 0x1a3   : > { %v2274_v10 = vpop.f32.mrf.mxu1 }
 0x1a4   : > { %v846_v11 = vadd.f32 %v1534_v56, %v2274_v10 }
 0x1a5   : > { %v1645_v12 = vpop.f32.mrf.mxu1 }
 0x1a6   : > { %v847_v13 = vmax.f32 %v846_v11, 0.0 }
 0x1a7   : > { %v2277_v14 = vpop.f32.mrf.mxu0  ;;  %v492_v35 = vpop.permute.xlu0 %491 }
 0x1a8   : > { %v965_v15 = vadd.f32 %v1534_v56, %v2277_v14  ;;  %v848_v16 = vmul.f32 %v1535_v59, %v847_v13  ;;  %v494_v36 = vadd.f32 %v492_v35, %v488_v62 }
 0x1a9   : > { %v1654_v17 = vpop.f32.mrf.mxu0 }
 0x1aa   : > { %v966_v18 = vmax.f32 %v965_v15, 0.0  ;;  %851 = vrot.lane.b32.xlu1 %v848_v16, %s1933_s12  ;;  %vm496_vm2 = vcmp.gt.f32.partialorder %v494_v36, %v495_v37 }
 0x1ab   : > { %v1536_v40 = vsel %vm496_vm2, 1.0, %v1928_v1 }
 0x1ac   : > { %v967_v19 = vmul.f32 %v1535_v59, %v966_v18 }
 0x1ae   : > { %970 = vrot.lane.b32.xlu0 %v967_v19, %s1933_s12 }
 0x1af   : > { %v2282_v20 = vpop.f32.mrf.mxu1 }
 0x1b0   : > { %v1084_v21 = vadd.f32 %v1534_v56, %v2282_v20 }
 0x1b1   : > { %v1663_v22 = vpop.f32.mrf.mxu1 }
 0x1b2   : > { %v1085_v23 = vmax.f32 %v1084_v21, 0.0 }
 0x1b3   : > { %v2285_v24 = vpop.f32.mrf.mxu0 }
 0x1b4   : > { %v1203_v25 = vadd.f32 %v1534_v56, %v2285_v24  ;;  %v1086_v26 = vmul.f32 %v1535_v59, %v1085_v23 }
 0x1b5   : > { %v1672_v27 = vpop.f32.mrf.mxu0 }
 0x1b6   : > { %v1204_v28 = vmax.f32 %v1203_v25, 0.0  ;;  %1089 = vrot.lane.b32.xlu1 %v1086_v26, %s1933_s12 }
 0x1b8   : > { %v1205_v29 = vmul.f32 %v1535_v59, %v1204_v28 }
 0x1ba   : > { %1208 = vrot.lane.b32.xlu0 %v1205_v29, %s1933_s12 }
 0x1bb   : > { %v2290_v30 = vpop.f32.mrf.mxu1 }
 0x1bc   : > { %v1322_v31 = vadd.f32 %v1534_v56, %v2290_v30 }
 0x1bd   : > { %v1681_v32 = vpop.f32.mrf.mxu1 }
 0x1be   : > { %v1323_v33 = vmax.f32 %v1322_v31, 0.0 }
 0x1c0   : > { %v1324_v34 = vmul.f32 %v1535_v59, %v1323_v33 }
 0x1c2   : > { %1327 = vrot.lane.b32.xlu1 %v1324_v34, %s1933_s12 }
 0x210   : > { %v614_v38 = vpop.permute.xlu1 %613 }
 0x211   : > { %v616_v39 = vadd.f32 %v614_v38, %v610_v6 }
 0x213   : > { %vm617_vm3 = vcmp.gt.f32.partialorder %v616_v39, %v495_v37 }
 0x214   : > { %v1541_v41 = vsel %vm617_vm3, 1.0, %v1928_v1  ;;  %v733_v42 = vpop.permute.xlu0 %732 }
 0x215   : > { %v735_v43 = vadd.f32 %v733_v42, %v729_v9  ;;  %v1749_v44 = vpack.i.bf16 %v1541_v41, %v1536_v40  ;;  %v637_v56 = vadd.f32 %v1541_v41, %v1536_v40 }
 0x217   : > { %vm736_vm4 = vcmp.gt.f32.partialorder %v735_v43, %v495_v37  ;;  %1750 = vrot.lane.b32.xlu0 %v1749_v44, %s1938_s19 }
 0x218   : > { %v1546_v45 = vsel %vm736_vm4, 1.0, %v1928_v1 }
 0x219   : > { %740 = vrot.lane.b32.xlu1 %v1546_v45, %s1938_s19  ;;  %v756_v59 = vadd.f32 %v1546_v45, %v637_v56 }
 0x21c   : > { %v852_v46 = vpop.permute.xlu1 %851 }
 0x21d   : > { %v854_v47 = vadd.f32 %v852_v46, %v848_v16 }
 0x21f   : > { %vm855_vm5 = vcmp.gt.f32.partialorder %v854_v47, %v495_v37 }
 0x220   : > { %v971_v48 = vpop.permute.xlu0 %970  ;;  %v1551_v49 = vsel %vm855_vm5, 1.0, %v1928_v1 }
 0x221   : > { %v973_v50 = vadd.f32 %v971_v48, %v967_v19  ;;  %859 = vrot.lane.b32.xlu0 %v1551_v49, %s1938_s19  ;;  %v875_v61 = vadd.f32 %v1551_v49, %v756_v59 }
 0x223   : > { %vm974_vm6 = vcmp.gt.f32.partialorder %v973_v50, %v495_v37 }
 0x224   : > { %v1556_v51 = vsel %vm974_vm6, 1.0, %v1928_v1 }
 0x225   : > { %978 = vrot.lane.b32.xlu1 %v1556_v51, %s1938_s19  ;;  %v994_v62 = vadd.f32 %v1556_v51, %v875_v61 }
 0x228   : > { %v1090_v52 = vpop.permute.xlu1 %1089 }
 0x229   : > { %v1092_v53 = vadd.f32 %v1090_v52, %v1086_v26 }
 0x22b   : > { %vm1093_vm7 = vcmp.gt.f32.partialorder %v1092_v53, %v495_v37 }
 0x22c   : > { %v1209_v54 = vpop.permute.xlu0 %1208  ;;  %v1561_v55 = vsel %vm1093_vm7, 1.0, %v1928_v1 }
 0x22d   : > { %v1211_v58 = vadd.f32 %v1209_v54, %v1205_v29  ;;  %1097 = vrot.lane.b32.xlu0 %v1561_v55, %s1938_s19  ;;  %v1113_v2 = vadd.f32 %v1561_v55, %v994_v62 }
 0x22f   : > { %vm1212_vm8 = vcmp.gt.f32.partialorder %v1211_v58, %v495_v37 }
 0x230   : > { %v1566_v60 = vsel %vm1212_vm8, 1.0, %v1928_v1 }
 0x231   : > { %1216 = vrot.lane.b32.xlu1 %v1566_v60, %s1938_s19  ;;  %v1232_v5 = vadd.f32 %v1566_v60, %v1113_v2 }
 0x234   : > { %v1328_v0 = vpop.permute.xlu1 %1327 }
 0x235   : > { %v1330_v3 = vadd.f32 %v1328_v0, %v1324_v34 }
 0x237   : > { %vm1331_vm9 = vcmp.gt.f32.partialorder %v1330_v3, %v495_v37 }
 0x238   : > { %v1571_v6 = vsel %vm1331_vm9, 1.0, %v1928_v1 }
 0x239   : > { %1335 = vrot.lane.b32.xlu0 %v1571_v6, %s1938_s19  ;;  %v1351_v7 = vadd.f32 %v1571_v6, %v1232_v5 }
 0x23b   : > { %v1352_v8 = vmul.f32 0.125, %v1351_v7 }
 0x23d   : > { %1353 = vst.msk [vmem:[%s335_s9] sm:$0xff] %vm509_vm10, %v1352_v8 }
 0x289   : > { %v1751_v9 = vpop.permute.xlu0 %1750 }
 0x28a   : > { %v1753_v11 = vunpack.i.h.bf16 %v1751_v9  ;;  %v1752_v12 = vunpack.i.l.bf16 %v1751_v9 }
 0x28b   : > { %v741_v13 = vpop.permute.xlu1 %740 }
 0x28c   : > { %v624_v15 = vmul.f32 %v1753_v11, %v2266_v63  ;;  %v503_v16 = vmul.f32 %v1752_v12, %v2259_v57  ;;  %v743_v17 = vmul.f32 %v741_v13, %v2269_v4 }
 0x28e   : > { %v2316_v1 = vmul.f32 %v624_v15, %v624_v15  ;;  %v2318_v18 = vmul.f32 %v503_v16, %v503_v16  ;;  %v2324_v19 = vmul.f32 %v743_v17, %v743_v17 }
 0x290   : > { %627 = vrot.lane.b32.xlu0 %v2316_v1, %s1934_s20  ;;  %506 = vrot.lane.b32.xlu1 %v2318_v18, %s1934_s20 }
 0x293   : > { %v860_v21 = vpop.permute.xlu0 %859 }
 0x294   : > { %v862_v22 = vmul.f32 %v860_v21, %v2274_v10  ;;  %746 = vrot.lane.b32.xlu1 %v2324_v19, %s1934_s20 }
 0x296   : > { %v2329_v57 = vmul.f32 %v862_v22, %v862_v22 }
 0x297   : > { %v979_v63 = vpop.permute.xlu1 %978 }
 0x298   : > { %v981_v4 = vmul.f32 %v979_v63, %v2277_v14  ;;  %865 = vrot.lane.b32.xlu0 %v2329_v57, %s1934_s20 }
 0x29a   : > { %v2334_v23 = vmul.f32 %v981_v4, %v981_v4 }
 0x29c   : > { %984 = vrot.lane.b32.xlu1 %v2334_v23, %s1934_s20 }
 0x29f   : > { %v1098_v25 = vpop.permute.xlu0 %1097 }
 0x2a0   : > { %v1100_v26 = vmul.f32 %v1098_v25, %v2282_v20 }
 0x2a2   : > { %v2339_v10 = vmul.f32 %v1100_v26, %v1100_v26 }
 0x2a3   : > { %v1217_v27 = vpop.permute.xlu1 %1216 }
 0x2a4   : > { %v1219_v28 = vmul.f32 %v1217_v27, %v2285_v24  ;;  %1103 = vrot.lane.b32.xlu0 %v2339_v10, %s1934_s20 }
 0x2a6   : > { %v2344_v14 = vmul.f32 %v1219_v28, %v1219_v28 }
 0x2a8   : > { %1222 = vrot.lane.b32.xlu1 %v2344_v14, %s1934_s20 }
 0x2ab   : > { %v1336_v29 = vpop.permute.xlu0 %1335 }
 0x2ac   : > { %v1338_v31 = vmul.f32 %v1336_v29, %v2290_v30 }
 0x2ae   : > { %v2349_v32 = vmul.f32 %v1338_v31, %v1338_v31 }
 0x2b0   : > { %1341 = vrot.lane.b32.xlu0 %v2349_v32, %s1934_s20 }
 0x302   : > { %v628_v20 = vpop.permute.xlu0 %627  ;;  %v507_v33 = vpop.permute.xlu1 %506 }
 0x303   : > { %v630_v24 = vsel %vm509_vm10, %v628_v20, 0.0  ;;  %v510_v34 = vsel %vm509_vm10, %v507_v33, 0.0 }
 0x304   : > { %631 = vadd.xlane.f32.xlu0 %v630_v24  ;;  %511 = vadd.xlane.f32.xlu1 %v510_v34 }
 0x306   : > { %v747_v35 = vpop.permute.xlu1 %746 }
 0x307   : > { %v749_v36 = vsel %vm509_vm10, %v747_v35, 0.0 }
 0x308   : > { %750 = vadd.xlane.f32.xlu0 %v749_v36 }
 0x30a   : > { %v866_v37 = vpop.permute.xlu0 %865 }
 0x30b   : > { %v868_v30 = vsel %vm509_vm10, %v866_v37, 0.0 }
 0x30c   : > { %869 = vadd.xlane.f32.xlu1 %v868_v30 }
 0x30e   : > { %v985_v38 = vpop.permute.xlu1 %984 }
 0x30f   : > { %v987_v39 = vsel %vm509_vm10, %v985_v38, 0.0 }
 0x310   : > { %988 = vadd.xlane.f32.xlu0 %v987_v39 }
 0x316   : > { %v1104_v40 = vpop.permute.xlu0 %1103 }
 0x317   : > { %v1106_v41 = vsel %vm509_vm10, %v1104_v40, 0.0 }
 0x318   : > { %1107 = vadd.xlane.f32.xlu1 %v1106_v41 }
 0x31a   : > { %v1223_v42 = vpop.permute.xlu1 %1222 }
 0x31b   : > { %v1225_v43 = vsel %vm509_vm10, %v1223_v42, 0.0 }
 0x31c   : > { %1226 = vadd.xlane.f32.xlu0 %v1225_v43 }
 0x322   : > { %v1342_v44 = vpop.permute.xlu0 %1341 }
 0x323   : > { %v1344_v45 = vsel %vm509_vm10, %v1342_v44, 0.0 }
 0x324   : > { %1345 = vadd.xlane.f32.xlu1 %v1344_v45 }
 0x38d   : > { %v632_v46 = vpop.xlane.xlu0 %631  ;;  %v512_v47 = vpop.xlane.xlu1 %511 }
 0x38e   : > { %v633_v48 = vmax.f32 %v632_v46, 1e-24  ;;  %v513_v50 = vmax.f32 %v512_v47, 1e-24 }
 0x390   : > { %1754 = vrcp.f32 %v633_v48 }
 0x391   : > { %v751_v49 = vpop.xlane.xlu0 %750  ;;  %1756 = vrcp.f32 %v513_v50 }
 0x392   : > { %v752_v52 = vmax.f32 %v751_v49, 1e-24 }
 0x394   : > { %1758 = vrcp.f32 %v752_v52 }
 0x395   : > { %v870_v51 = vpop.xlane.xlu1 %869 }
 0x396   : > { %v871_v54 = vmax.f32 %v870_v51, 1e-24 }
 0x398   : > { %1760 = vrcp.f32 %v871_v54 }
 0x399   : > { %v989_v53 = vpop.xlane.xlu0 %988 }
 0x39a   : > { %v990_v56 = vmax.f32 %v989_v53, 1e-24 }
 0x39c   : > { %1762 = vrcp.f32 %v990_v56 }
 0x39d   : > { %v1755_v61 = vpop.eup %1754 }
 0x39e   : > { %v1757_v62 = vpop.eup %1756  ;;  %v635_v5 = vmul.f32 %v1755_v61, %v2316_v1 }
 0x39f   : > { %v515_v6 = vmul.f32 %v1757_v62, %v2318_v18 }
 0x3a1   : > { %v1108_v55 = vpop.xlane.xlu1 %1107  ;;  %v1759_v3 = vpop.eup %1758  ;;  %v636_v11 = vadd.f32 %v635_v5, %v515_v6 }
 0x3a2   : > { %v1109_v58 = vmax.f32 %v1108_v55, 1e-24  ;;  %v754_v8 = vmul.f32 %v1759_v3, %v2324_v19 }
 0x3a4   : > { %1764 = vrcp.f32 %v1109_v58  ;;  %v755_v15 = vadd.f32 %v754_v8, %v636_v11 }
 0x3a5   : > { %v1227_v59 = vpop.xlane.xlu0 %1226  ;;  %v1761_v7 = vpop.eup %1760 }
 0x3a6   : > { %v1228_v60 = vmax.f32 %v1227_v59, 1e-24  ;;  %v873_v12 = vmul.f32 %v1761_v7, %v2329_v57 }
 0x3a8   : > { %1766 = vrcp.f32 %v1228_v60  ;;  %v874_v1 = vadd.f32 %v873_v12, %v755_v15 }
 0x3a9   : > { %v1763_v9 = vpop.eup %1762 }
 0x3aa   : > { %v992_v16 = vmul.f32 %v1763_v9, %v2334_v23 }
 0x3ac   : > { %v993_v18 = vadd.f32 %v992_v16, %v874_v1 }
 0x3ad   : > { %v1346_v0 = vpop.xlane.xlu1 %1345 }
 0x3ae   : > { %v1347_v2 = vmax.f32 %v1346_v0, 1e-24 }
 0x3b0   : > { %1768 = vrcp.f32 %v1347_v2 }
 0x3b1   : > { %v1765_v13 = vpop.eup %1764 }
 0x3b2   : > { %v1111_v21 = vmul.f32 %v1765_v13, %v2339_v10 }
 0x3b5   : > { %v1767_v17 = vpop.eup %1766 }
 0x3b6   : > { %v1230_v19 = vmul.f32 %v1767_v17, %v2344_v14 }
 0x3b7   : > { %1839 = shalt.err (!%p1836_p5)
}
 0x3b8   : > { %s1840_s19 = scalar_lea.hbm %s2373_s22, 128  ;;  %s1844_s16 = scalar_lea.hbm %s2447_s6, 256 }
 0x3b9   : > { %p1841_p9 = scmp.ne.s32.totalorder %s2373_s22, %s1840_s19  ;;  %p1845_p12 = scmp.lt.s32.totalorder %s2373_s22, %s2447_s6 }
 0x3ba   : > { %p1846_p1 = scmp.lt.s32.totalorder %s1844_s16, %s1840_s19 }
 0x3bb   : > { %p1842_p0 = pnand %p1841_p9, %p2464_p3 }
 0x3bc   : > { %p1847_p6 = por %p1846_p1, %p1845_p12 }
 0x3bd   : > { %p1843_p11 = pneg %p1842_p0 }
 0x3bf   : > { %p1848_p13 = pnand %p1847_p6, %p1843_p11 }
 0x3c1   : > { %1851 = shalt.err (!%p1848_p13)
}
 0x3c2   : > { %1686 = dma.vmem_to_hbm [thread:$0]  (%p2464_p3), %s1380_s25, 128, %s2373_s22, %s1361_s18   ;;  %v1112_v22 = vadd.f32 %v1111_v21, %v993_v18  ;;  %v1769_v57 = vpop.eup %1768 }
 0x3c3   : > { %v1349_v4 = vmul.f32 %v1769_v57, %v2349_v32  ;;  %s342_s21 = scalar_lea.vmem [#allocation9], %s2133_s10  ;;  %s2465_s30 = sshll.u32 %s2005_s5, 7 }
 0x3c4   : > { %v1231_v63 = vadd.f32 %v1230_v19, %v1112_v22  ;;  %s1392_s17 = sshll.u32 %s342_s21, 4  ;;  %s2403_s9 = scalar_lea.hbm %s2448_s7, %s2465_s30  ;;  %s1393_s17 = int_to_ptr.vmem [resolvable:$true] %s1392_s17 }
 0x3c5   : > { %s1366_s22 = scalar_lea.sflag [#allocation10], %s2130_s23  ;;  %s1852_s25 = scalar_lea.vmem %s1393_s17, 128 }
 0x3c6   : > { %v1350_v23 = vadd.f32 %v1349_v4, %v1231_v63  ;;  %p1853_p7 = scmp.ne.s32.totalorder %s1393_s17, %s1852_s25  ;;  %s1940_s18 = smov [#allocation9]  }
 0x3c8   : > { %v1354_v25 = vmul.f32 0.125, %v1350_v23  ;;  %p1854_p8 = pnand %p1853_p7, %p2464_p3 }
 0x3ca   : > { %1356 = vrot.lane.b32.xlu0 %v1354_v25, %s1934_s20  ;;  %p1855_p10 = pneg %p1854_p8  ;;  %s1856_s20 = sshll.u32 %s1940_s18, 4  ;;  %s1857_s20 = int_to_ptr.vmem [resolvable:$false] %s1856_s20 }
 0x3cb   : > { %s1858_s10 = scalar_lea.vmem %s1857_s20, 256  ;;  %p1859_p2 = scmp.lt.s32.totalorder %s1393_s17, %s1857_s20 }
 0x3cc   : > { %p1860_p4 = scmp.lt.s32.totalorder %s1858_s10, %s1852_s25 }
 0x3ce   : > { %p1861_p5 = por %p1860_p4, %p1859_p2 }
 0x3d0   : > { %p1862_p9 = pnand %p1861_p5, %p1855_p10 }
 0x43c   : > { %v1357_v26 = vpop.permute.xlu0 %1356 }
 0x43d   : > { %1359 = vst.msk [vmem:[%s342_s21] sm:$0xff] %vm509_vm10, %v1357_v26 }
 0x43e   : > { %1865 = shalt.err (!%p1862_p9)
}
 0x43f   : > { %s1866_s5 = scalar_lea.hbm %s2403_s9, 128  ;;  %s1870_s16 = scalar_lea.hbm %s2448_s7, 256 }
 0x440   : > { %p1867_p0 = scmp.ne.s32.totalorder %s2403_s9, %s1866_s5  ;;  %p1871_p1 = scmp.lt.s32.totalorder %s2403_s9, %s2448_s7 }
 0x441   : > { %p1872_p6 = scmp.lt.s32.totalorder %s1870_s16, %s1866_s5 }
 0x442   : > { %p1868_p11 = pnand %p1867_p0, %p2464_p3 }
 0x443   : > { %p1873_p13 = por %p1872_p6, %p1871_p1 }
 0x444   : > { %p1869_p12 = pneg %p1868_p11 }
 0x446   : > { %p1874_p7 = pnand %p1873_p13, %p1869_p12 }
 0x448   : > { %1877 = shalt.err (!%p1874_p7)
}
 0x449   : > { %1687 = dma.vmem_to_hbm [thread:$0]  (%p2464_p3), %s1393_s17, 128, %s2403_s9, %s1366_s22  }
 0x44a PF: > { %s1404_s30 = sand.u32 1, %s1912_s26   ;;  %p2466_p8 = scmp.ne.s32.totalorder %s2456_s15, 0 }
 0x44b   : > { %p2467_p10 = scmp.ge.s32.totalorder %s1924_s29, 2  ;;  %s1405_s13 = scalar_lea.sflag [#allocation5], %s1404_s30 }
 0x44d   : > { %p1698_p2 = pnand %p2467_p10, %p2466_p8 }
 0x44f   : > { %p1699_p4 = pneg %p1698_p2 }
 0x451   : > { %1903 = dma.done.wait (%p1699_p4), %s1405_s13, 128  }
 0x452   : > { %1905 = vsyncadd (%p1699_p4), %s1405_s13, 4294967168  ;;  %s1414_s19 = scalar_lea.sflag [#allocation10], %s1404_s30 }
 0x453   : > { %1907 = dma.done.wait (%p1699_p4), %s1414_s19, 128  }
 0x454   : > { %1909 = vsyncadd (%p1699_p4), %s1414_s19, 4294967168  ;;  %p28_p3 = scmp.ge.s32.totalorder %s2009_s8, 4   ;;  %s2468_s26 = smov %s1916_s27 }
 0x455   : > { %s2469_s27 = smov %s1920_s28  ;;  %s2470_s28 = smov %s2021_s11 }
 0x456   : > { %s2471_s29 = smov %s2009_s8  ;;  %30 = sbr.rel (!%p28_p3) target bundleno = 11 (0xb), region = 119 }
 0x45b   :  { %1419 = vsyncpa [#allocation4], 1 }
 0x45c   :  { %1421 = vsyncpa [#allocation4 + $0x1], 1 }
 0x45d   :  { %1422 = vsyncpa [#allocation7], 1 }
 0x45e   :  { %1424 = vsyncpa [#allocation7 + $0x1], 1 }
 0x45f   :  { %1425 = vsyncpa [#allocation5], 1 }
 0x460   :  { %1427 = vsyncpa [#allocation5 + $0x1], 1 }
 0x461   :  { %1428 = vsyncpa [#allocation10], 1 }
 0x462   :  { %1430 = vsyncpa [#allocation10 + $0x1], 1 }

</bundles_post_ra>
